<compile_context>
chip_gen: v6e
topology: v6e:2x2x1
jax: 0.10.0
libtpu: 0.0.40
codegen_flags: <defaults>
</compile_context>

<pallas_src>
import jax
import jax.numpy as jnp
from jax.experimental import pallas as pl
from jax.experimental.pallas import tpu as pltpu


def resgnn_kernel(a_ref, h_ref, r_ref, o_ref, acc_ref):
    """out[i] = sum_k A[i,k] @ h[k]  +  r[i]   (r = x@W_res + b, precomputed)."""
    k = pl.program_id(1)
    tk = a_ref.shape[1]  # static tile size along the reduction axis

    @pl.when(k == 0)
    def _init():
        acc_ref[...] = jnp.zeros_like(acc_ref)

    # Neighborhood aggregation on the MXU: acc += A[i-tile, k-tile] @ h[k-tile].
    # h is resident in VMEM for the whole grid; slice the current k-tile.
    start = pl.multiple_of(k * tk, tk)
    h_tile = h_ref[pl.ds(start, tk), :]
    acc_ref[...] += jnp.dot(a_ref[...], h_tile, preferred_element_type=jnp.float32)

    @pl.when(k == pl.num_programs(1) - 1)
    def _finalize():
        # Residual + bias (precomputed, f32) added once per output tile.
        o_ref[...] = (acc_ref[...] + r_ref[...]).astype(o_ref.dtype)


def res_gnn_layer(x, adj, w_layer, b_layer, w_res, *, tm=512, tk=512):
    n, c_in = x.shape
    c_out = w_layer.shape[1]
    assert adj.shape == (n, n)

    # Clamp tiles to the problem size; keep them multiples of 256 when possible.
    tm = min(tm, n)
    tk = min(tk, n)
    assert n % tm == 0 and n % tk == 0, "demo requires N divisible by tile sizes"

    # Lane-dense output: pad the output feature dim up to a multiple of 128.
    c_pad = max(128, ((c_out + 127) // 128) * 128)

    # Hoisted feature transform (tiny XLA GEMMs, done once):
    #   h = x @ W          -> aggregated by the kernel (bf16 MXU operand)
    #   r = x @ W_res + b  -> residual + bias, added in the finalize (f32)
    b2 = jnp.reshape(b_layer, (1, -1)).astype(jnp.float32)  # accept (C,) or (1,C)
    h = jnp.pad(x @ w_layer, ((0, 0), (0, c_pad - c_out))).astype(jnp.bfloat16)
    r = jnp.pad(x @ w_res + b2, ((0, 0), (0, c_pad - c_out))).astype(jnp.float32)
    a_bf = adj.astype(jnp.bfloat16)

    # h stays fully resident in VMEM (see TODO for a streamed fallback).
    assert n * c_pad * 2 <= 32 * 1024 * 1024, "resident h would not fit VMEM"

    grid = (n // tm, n // tk)  # (row tiles [parallel], neighbor tiles [reduction])

    # VMEM budget sized to the tiles, capped for the 64 MiB v7x ceiling.
    vmem_needed = (
        2 * tm * tk * 2          # A double buffer (bf16)
        + 2 * n * c_pad * 2      # resident h (allow double buffer, bf16)
        + 2 * tm * c_pad * 4     # r double buffer (f32)
        + 2 * tm * c_pad * 4     # output double buffer (f32)
        + tm * c_pad * 4         # accumulator scratch (f32)
        + (4 << 20)              # slack
    )
    vmem_limit = int(min(max(vmem_needed, 16 << 20), 48 << 20))

    out_padded = pl.pallas_call(
        resgnn_kernel,
        out_shape=jax.ShapeDtypeStruct((n, c_pad), jnp.float32),
        grid_spec=pltpu.PrefetchScalarGridSpec(
            num_scalar_prefetch=0,
            grid=grid,
            in_specs=[
                pl.BlockSpec((tm, tk), lambda i, k: (i, k)),       # A tile
                pl.BlockSpec((n, c_pad), lambda i, k: (0, 0)),     # h (resident)
                pl.BlockSpec((tm, c_pad), lambda i, k: (i, 0)),    # r (per row tile)
            ],
            out_specs=pl.BlockSpec((tm, c_pad), lambda i, k: (i, 0)),
            scratch_shapes=[pltpu.VMEM((tm, c_pad), jnp.float32)],  # lane-dense acc
        ),
        compiler_params=pltpu.CompilerParams(
            dimension_semantics=("parallel", "arbitrary"),
            vmem_limit_bytes=vmem_limit,
        ),
    )(a_bf, h, r)

    return out_padded[:, :c_out]


def reference(x, adj, w_layer, b_layer, w_res):
    b2 = jnp.reshape(b_layer, (1, -1))
    return adj @ (x @ w_layer) + b2 + x @ w_res


if __name__ == "__main__":
    # 1024 nodes, 32 -> 64 features: grid (2, 2) with 512x512 A tiles, so both
    # the parallel (2 row tiles -> feeds both v7x TCs) and reduction axes run.
    N, C_IN, C_OUT = 1024, 32, 64
    key = jax.random.PRNGKey(0)
    kx, ka, kw, kb, kr = jax.random.split(key, 5)

    x = jax.random.normal(kx, (N, C_IN), dtype=jnp.float32)

    # Symmetric-normalized dense adjacency with self loops (GCN style).
    raw = (jax.random.uniform(ka, (N, N)) > 0.7).astype(jnp.float32)
    adj = jnp.maximum(raw, raw.T) + jnp.eye(N, dtype=jnp.float32)
    deg = jnp.sum(adj, axis=1, keepdims=True)
    adj = adj / jnp.sqrt(deg) / jnp.sqrt(deg.T)

    # Deterministic parameter init (nn.Linear-style shapes; 1-D bias like torch).
    w_layer = jax.random.normal(kw, (C_IN, C_OUT), dtype=jnp.float32) * 0.1
    b_layer = jax.random.normal(kb, (C_OUT,), dtype=jnp.float32) * 0.1
    w_res = jax.random.normal(kr, (C_IN, C_OUT), dtype=jnp.float32) * 0.1

    out = res_gnn_layer(x, adj, w_layer, b_layer, w_res)
    out = jax.block_until_ready(out)

    ref = reference(x, adj, w_layer, b_layer, w_res)
    assert out.shape == (N, C_OUT)
    # bf16 MXU operands (f32 accumulation) -> loosened tolerance vs f32 reference.
    max_err = jnp.max(jnp.abs(out - ref))
    assert jnp.allclose(out, ref, atol=5e-2, rtol=5e-2), (
        f"mismatch vs reference (max abs err {max_err})"
    )
    print("KERNEL_OK")
</pallas_src>

<mosaic_0001>
module attributes {stable_mosaic.version = 11 : i64} {
  func.func @resgnn_kernel(%arg0: i32, %arg1: i32, %arg2: memref<512x512xbf16, #tpu.memory_space<vmem>>, %arg3: memref<1024x128xbf16, #tpu.memory_space<vmem>>, %arg4: memref<512x128xf32, #tpu.memory_space<vmem>>, %arg5: memref<512x128xf32, #tpu.memory_space<vmem>>, %arg6: memref<512x128xf32, #tpu.memory_space<vmem>>) attributes {dimension_semantics = [#tpu.dimension_semantics<parallel>, #tpu.dimension_semantics<arbitrary>], iteration_bounds = array<i64: 2, 2>, scalar_prefetch = 0 : i64, scratch_operands = 1 : i64, tpu.core_type = #tpu.core_type<tc>, window_params = [{transform_indices = @transform_0, window_bounds = array<i64: 512, 512>}, {pipeline_mode = #tpu.pipeline_mode<synchronous>, transform_indices = @transform_1, window_bounds = array<i64: 1024, 128>}, {transform_indices = @transform_2, window_bounds = array<i64: 512, 128>}, {transform_indices = @transform_3, window_bounds = array<i64: 512, 128>}]} {
    %c0_i32 = arith.constant 0 : i32
    %0 = arith.cmpi eq, %arg1, %c0_i32 : i32
    %1 = arith.extui %0 : i1 to i32
    %c0_i32_0 = arith.constant 0 : i32
    %2 = arith.cmpi ne, %1, %c0_i32_0 : i32
    scf.if %2 {
      %cst_8 = arith.constant 0.000000e+00 : f32
      %15 = vector.broadcast %cst_8 : f32 to vector<512x128xf32>
      %c0_9 = arith.constant 0 : index
      %c0_10 = arith.constant 0 : index
      %16 = vector.load %arg6[%c0_9, %c0_10] : memref<512x128xf32, #tpu.memory_space<vmem>>, vector<512x128xf32>
      tpu.vector_store %arg6[%c0_9, %c0_10], %15 {strides = array<i32>} : memref<512x128xf32, #tpu.memory_space<vmem>>, vector<512x128xf32>,
    } else {
    }
    %c512_i32 = arith.constant 512 : i32
    %3 = arith.muli %arg1, %c512_i32 : i32
    %4 = tpu.assume_multiple %3, 512 : i32
    %5 = arith.index_cast %4 : i32 to index
    %c0 = arith.constant 0 : index
    %6 = vector.load %arg3[%5, %c0] : memref<1024x128xbf16, #tpu.memory_space<vmem>>, vector<512x128xbf16>
    %c0_1 = arith.constant 0 : index
    %c0_2 = arith.constant 0 : index
    %7 = vector.load %arg6[%c0_1, %c0_2] : memref<512x128xf32, #tpu.memory_space<vmem>>, vector<512x128xf32>
    %c0_3 = arith.constant 0 : index
    %c0_4 = arith.constant 0 : index
    %8 = vector.load %arg2[%c0_3, %c0_4] : memref<512x512xbf16, #tpu.memory_space<vmem>>, vector<512x512xbf16>
    %cst = arith.constant dense<0.000000e+00> : vector<512x128xf32>
    %9 = tpu.matmul %8, %6, %cst {dimension_numbers = #tpu.dot_dimension_numbers<[1], [0], [0], [1], [0, 0, 1, 1], [], []>} : vector<512x512xbf16>, vector<512x128xbf16>, vector<512x128xf32> -> vector<512x128xf32>
    %10 = arith.addf %7, %9 : vector<512x128xf32>
    %c0_5 = arith.constant 0 : index
    %c0_6 = arith.constant 0 : index
    %11 = vector.load %arg6[%c0_5, %c0_6] : memref<512x128xf32, #tpu.memory_space<vmem>>, vector<512x128xf32>
    tpu.vector_store %arg6[%c0_5, %c0_6], %10 {strides = array<i32>} : memref<512x128xf32, #tpu.memory_space<vmem>>, vector<512x128xf32>,
    %c1_i32 = arith.constant 1 : i32
    %12 = arith.cmpi eq, %arg1, %c1_i32 : i32
    %13 = arith.extui %12 : i1 to i32
    %c0_i32_7 = arith.constant 0 : i32
    %14 = arith.cmpi ne, %13, %c0_i32_7 : i32
    scf.if %14 {
      %c0_8 = arith.constant 0 : index
      %c0_9 = arith.constant 0 : index
      %15 = vector.load %arg6[%c0_8, %c0_9] : memref<512x128xf32, #tpu.memory_space<vmem>>, vector<512x128xf32>
      %c0_10 = arith.constant 0 : index
      %c0_11 = arith.constant 0 : index
      %16 = vector.load %arg4[%c0_10, %c0_11] : memref<512x128xf32, #tpu.memory_space<vmem>>, vector<512x128xf32>
      %17 = arith.addf %15, %16 : vector<512x128xf32>
      %c0_12 = arith.constant 0 : index
      %c0_13 = arith.constant 0 : index
      %18 = vector.load %arg5[%c0_12, %c0_13] : memref<512x128xf32, #tpu.memory_space<vmem>>, vector<512x128xf32>
      tpu.vector_store %arg5[%c0_12, %c0_13], %17 {strides = array<i32>} : memref<512x128xf32, #tpu.memory_space<vmem>>, vector<512x128xf32>,
    } else {
    }
    return
  }
  func.func @transform_0(%arg0: i32, %arg1: i32) -> (i32, i32) {
    %c0_i32 = arith.constant 0 : i32
    return %arg0, %arg1 : i32, i32
  }
  func.func @transform_1(%arg0: i32, %arg1: i32) -> (i32, i32) {
    %c0_i32 = arith.constant 0 : i32
    %c0_i32_0 = arith.constant 0 : i32
    %c0_i32_1 = arith.constant 0 : i32
    return %c0_i32, %c0_i32_0 : i32, i32
  }
  func.func @transform_2(%arg0: i32, %arg1: i32) -> (i32, i32) {
    %c0_i32 = arith.constant 0 : i32
    %c0_i32_0 = arith.constant 0 : i32
    return %arg0, %c0_i32 : i32, i32
  }
  func.func @transform_3(%arg0: i32, %arg1: i32) -> (i32, i32) {
    %c0_i32 = arith.constant 0 : i32
    %c0_i32_0 = arith.constant 0 : i32
    return %arg0, %c0_i32 : i32, i32
  }
}

</mosaic_0001>

<bundles_post_ra>
// kernel: tpu_custom_call.1
= control target key start
LH: loop header
LB: loop body
LE: loop exit
PB: predicated region body
PF: predicated region fallthrough
CT: control target
= control target key end

     0   :  { %s3989_s0 = inlined_call_operand.hbm [shape: bf16[1024,1024], index: 0, kind: input, shape index: {}]   ;;  %s3990_s1 = inlined_call_operand.hbm [shape: bf16[1024,128], index: 1, kind: input, shape index: {}]   ;;  %s3991_s2 = inlined_call_operand.hbm [shape: f32[1024,128], index: 2, kind: input, shape index: {}]   ;;  %s3992_s3 = inlined_call_operand.hbm [shape: f32[1024,128], index: 3, kind: output, shape index: {}]  }
   0x1   :  { %4001 = sst [smem:[#allocation19_spill]] %s3989_s0 }
   0x2   :  { %4002 = sst [smem:[#allocation20_spill]] %s3992_s3 }
   0x3   :  { %8 = vsyncpa [#allocation4], 0 }
   0x4   :  { %10 = vsyncpa [#allocation4 + $0x1], 0 }
   0x5   :  { %11 = vsyncpa [#allocation7], 0 }
   0x6   :  { %12 = vsyncpa [#allocation5], 0 }
   0x7   :  { %14 = vsyncpa [#allocation5 + $0x1], 0  ;;  %s3313_s12 = smov 0   ;;  %s3315_s13 = smov 0  }
   0x8   :  { %s3317_s14 = smov 0   ;;  %s3319_s15 = smov 0  }
   0x9   :  { %s3321_s16 = smov 0   ;;  %s3323_s17 = smov 0  }
   0xa   :  { %s3325_s18 = smov 0   ;;  %s3327_s19 = smov 0  }
   0xb   :  { %s3329_s20 = smov 0   ;;  %s3331_s21 = smov 0  }
   0xc   :  { %s3333_s22 = smov 0  }
   0xd LB: > { %4003 = sst [smem:[#allocation14_spill]] %s3264_s19  ;;  %s29_s23 = sadd.s32 1, %s3268_s20  ;;  %s3276_s22 = sphi %s3333_s22, %s20_s22   ;;  %s3272_s21 = sphi %s3331_s21, %s4030_s21   ;;  %s3268_s20 = sphi %s3329_s20, %s4029_s20   ;;  %s3264_s19 = sphi %s3327_s19, %s4028_s19   ;;  %s3260_s18 = sphi %s3325_s18, %s4027_s18   ;;  %s3256_s17 = sphi %s3323_s17, %s4036_s17   ;;  %s3252_s16 = sphi %s3321_s16, %s4035_s16   ;;  %s3248_s15 = sphi %s3319_s15, %s4034_s15   ;;  %s3244_s14 = sphi %s3317_s14, %s4033_s14   ;;  %s3240_s13 = sphi %s3315_s13, %s4032_s13   ;;  %s3236_s12 = sphi %s3313_s12, %s4031_s12  }
   0xe   : > { %4004 = sst [smem:[#allocation15_spill]] %s3268_s20  ;;  %s32_s24 = sadd.s32 1, %s3272_s21 }
   0xf   : > { %4005 = sst [smem:[#allocation16_spill]] %s3272_s21  ;;  %p30_p0 = scmp.ge.s32.totalorder %s29_s23, 2 }
  0x10   : > { %s41_s25 = sadd.s32 1, %s3256_s17  ;;  %p48_p1 = scmp.ne.s32.totalorder %s3256_s17, %s3252_s16 }
  0x11   : > { %p3997_p2 = scmp.eq.s32.totalorder %s3276_s22, 0  ;;  %s4038_s23 = smov (%p30_p0, %s29_s23), 0 }
  0x12   : > { %4006 = sst [smem:[#allocation17_spill]] %s4038_s23  ;;  %s4040_s24 = smov (!%p30_p0, %s32_s24), %s3272_s21 }
  0x13   : > { %s37_s26 = ssub.s32 %s3268_s20, %s4038_s23  ;;  %p3381_p3 = por %p3997_p2, %p48_p1 }
  0x14   : > { %p34_p4 = scmp.ge.s32.totalorder %s4040_s24, 2  ;;  %p3996_p5 = scmp.lt.s32.totalorder %s3276_s22, 4 }
  0x15   : > { %s164_s28 = sand.u32 1, %s3276_s22   ;;  %s166_s29 = sand.u32 1, %s3256_s17  }
  0x16   : > { %s4042_s24 = smov (%p34_p4, %s4040_s24), 0  ;;  %s2528_s4 = sshll.u32 %s166_s29, 10 }
  0x17   : > { %4008 = sst [smem:[#allocation18_spill]] %s4042_s24  ;;  %s3392_s30 = ssub.s32 %s3272_s21, %s4042_s24 }
  0x18   : > { %s38_s5 = sor.u32 %s37_s26, %s3392_s30  ;;  %s2530_s6 = sshll.u32 %s3268_s20, 2 }
  0x19   : > { %p39_p7 = scmp.eq.s32.totalorder %s38_s5, 0  ;;  %s2710_s7 = sshll.u32 %s3272_s21, 9 }
  0x1a   : > { %s175_s9 = sadd.s32 %s2710_s7, %s2530_s6  ;;  %s168_s10 = scalar_lea.vmem [#allocation3], %s2528_s4 }
  0x1b   : > { %s3399_s8 = scalar_select %p39_p7, %s3256_s17, %s41_s25  }
  0x1c   : > { %s178_s11 = sshll.u32 %s168_s10, 4  ;;  %s2532_s23 = sshll.u32 %s175_s9, 6  ;;  %s179_s11 = int_to_ptr.vmem [resolvable:$true] %s178_s11 }
  0x1d   : > { %s4009_s0 = sld [smem:[#allocation19_spill]]  ;;  %p3408_p8 = pnand %p3996_p5, %p3381_p3 }
  0x1e   : > { %s3412_s26 = scalar_lea.sflag [#allocation4], %s164_s28  ;;  %s3079_s25 = scalar_lea.vmem %s179_s11, 16384 }
  0x1f   : > { %p3068_p9 = pneg %p3408_p8  ;;  %p3080_p10 = scmp.ne.s32.totalorder %s179_s11, %s3079_s25 }
  0x20   : > { %s3278_s4 = smov [#allocation3]  }
  0x21   : > { %p3082_p11 = pnand %p3080_p10, %p3068_p9  ;;  %s3084_s5 = sshll.u32 %s3278_s4, 4  ;;  %s3085_s5 = int_to_ptr.vmem [resolvable:$false] %s3084_s5 }
  0x22   : > { %s3086_s3 = scalar_lea.vmem %s3085_s5, 32768  ;;  %p3087_p13 = scmp.lt.s32.totalorder %s179_s11, %s3085_s5 }
  0x23   : > { %s177_s24 = scalar_lea.hbm %s4009_s0, %s2532_s23  ;;  %p3083_p12 = pneg %p3082_p11 }
  0x24   : > { %p3088_p0 = scmp.lt.s32.totalorder %s3086_s3, %s3079_s25 }
  0x26   : > { %p3089_p1 = por %p3088_p0, %p3087_p13 }
  0x28   : > { %p3090_p3 = pnand %p3089_p1, %p3083_p12 }
  0x2a   : > { %3093 = shalt.err (!%p3090_p3)
}
  0x2b   : > { %s3279_s19 = smov 512   ;;  %s3280_s23 = smov 256  }
  0x2c   : > { %s3281_s27 = smov 16   ;;  %s3420_s28 = sadd.s32 4294967295, %s3276_s22  }
  0x2d   : > { %2730 = dma.hbm_to_vmem [thread:$0]  (!%p3408_p8), %s177_s24, 16384, %s179_s11, %s3412_s26, %s3279_s19, %s3280_s23, %s3281_s27  }
  0x2e   : > { %s2524_s6 = sadd.s32 4294967294, %s3276_s22   ;;  %p54_p4 = scmp.ne.s32.totalorder %s3252_s16, %s3248_s15 }
  0x2f   : > { %p55_p7 = scmp.eq.s32.totalorder %s3420_s28, 0  ;;  %p101_p9 = scmp.ne.s32.totalorder %s3240_s13, %s3236_s12 }
  0x30   : > { %p131_p8 = scmp.eq.s32.totalorder %s2524_s6, 3  ;;  %p2525_p13 = scmp.ge.s32.totalorder %s3276_s22, 1 }
  0x31   : > { %p3431_p11 = por %p55_p7, %p54_p4  ;;  %p3437_p12 = por %p101_p9, %p55_p7 }
  0x32   : > { %p3442_p0 = por %p131_p8, %p101_p9  ;;  %p138_p1 = scmp.lt.s32.totalorder %s3276_s22, 5 }
  0x33   : > { %s4012_s7 = scalar_select %p3437_p12, 1, 0 }
  0x34   : > { %s4013_s15 = scalar_select %p3442_p0, 1, 0 }
  0x35   : > { %p3447_p3 = pnand %p2525_p13, %p138_p1  ;;  %s3282_s10 = smov [#allocation6]  }
  0x36   : > { %s150_s11 = sshll.u32 %s3282_s10, 4  ;;  %s2711_s29 = sshll.u32 %s3272_s21, 13  ;;  %s151_s11 = int_to_ptr.vmem [resolvable:$true] %s150_s11 }
  0x37   : > { %p2723_p4 = pneg %p3447_p3  ;;  %s88_s4 = sadd.s32 1, %s3244_s14 }
  0x38   : > { %p95_p9 = scmp.ne.s32.totalorder %s3244_s14, %s3240_s13  ;;  %s190_s5 = sand.u32 1, %s3244_s14  }
  0x39   : > { %p3456_p5 = pnand %p2723_p4, %p55_p7  ;;  %s3105_s3 = scalar_lea.vmem %s151_s11, 8192 }
  0x3a   : > { %p3106_p13 = scmp.ne.s32.totalorder %s151_s11, %s3105_s3  ;;  %p3113_p2 = scmp.lt.s32.totalorder %s151_s11, %s151_s11 }
  0x3b   : > { %p3096_p8 = pneg %p3456_p5  ;;  %p3114_p6 = scmp.lt.s32.totalorder %s3105_s3, %s3105_s3 }
  0x3d   : > { %p3108_p1 = pnand %p3106_p13, %p3096_p8  ;;  %p3115_p0 = por %p3114_p6, %p3113_p2 }
  0x3f   : > { %p3109_p10 = pneg %p3108_p1 }
  0x41   : > { %p3116_p12 = pnand %p3115_p0, %p3109_p10 }
  0x43   : > { %3119 = shalt.err (!%p3116_p12)
}
  0x44   : > { %s3283_s19 = smov 64   ;;  %s3284_s23 = smov 4  }
  0x45   : > { %2726 = dma.hbm_to_vmem [thread:$0]  (!%p3456_p5), %s3990_s1, 8192, %s151_s11, [#allocation7], %s3283_s19, %s3283_s19, %s3284_s23  }
  0x46   : > { %p4016_p2 = scmp.eq.s32.totalorder %s3392_s30, 0  ;;  %p4017_p6 = scmp.eq.s32.totalorder %s3276_s22, 0 }
  0x47   : > { %p4018_p12 = scmp.eq.s32.totalorder %s3420_s28, 3  ;;  %s2533_s0 = sshll.u32 %s190_s5, 9 }
  0x48   : > { %s3474_s10 = scalar_select %p4016_p2, %s3244_s14, %s88_s4  }
  0x49   : > { %p97_p10 = por %p95_p9, %p4017_p6  ;;  %p3486_p0 = por %p4018_p12, %p95_p9 }
  0x4a   : > { %s198_s25 = scalar_lea.hbm %s3991_s2, %s2711_s29  ;;  %p4020_p4 = scmp.lt.s32.totalorder %s3276_s22, 4 }
  0x4b   : > { %s192_s30 = scalar_lea.vmem [#allocation8], %s2533_s0  ;;  %s3285_s5 = smov [#allocation8]  }
  0x4c   : > { %p3495_p8 = pnand %p4020_p4, %p97_p10  ;;  %s199_s4 = sshll.u32 %s192_s30, 4  ;;  %s200_s4 = int_to_ptr.vmem [resolvable:$true] %s199_s4 }
  0x4d   : > { %s3133_s19 = scalar_lea.vmem %s200_s4, 8192  ;;  %s3138_s23 = sshll.u32 %s3285_s5, 4  ;;  %s3139_s23 = int_to_ptr.vmem [resolvable:$false] %s3138_s23 }
  0x4e   : > { %p3122_p5 = pneg %p3495_p8  ;;  %p3134_p9 = scmp.ne.s32.totalorder %s200_s4, %s3133_s19 }
  0x4f   : > { %s3140_s20 = scalar_lea.vmem %s3139_s23, 16384  ;;  %p3141_p2 = scmp.lt.s32.totalorder %s200_s4, %s3139_s23 }
  0x50   : > { %p3136_p13 = pnand %p3134_p9, %p3122_p5  ;;  %p3142_p6 = scmp.lt.s32.totalorder %s3140_s20, %s3133_s19 }
  0x52   : > { %p3137_p1 = pneg %p3136_p13  ;;  %p3143_p10 = por %p3142_p6, %p3141_p2 }
  0x54   : > { %p3144_p12 = pnand %p3143_p10, %p3137_p1 }
  0x56   : > { %3147 = shalt.err (!%p3144_p12)
}
  0x57   : > { %s3286_s21 = smov 128   ;;  %s3287_s0 = smov 8  }
  0x58   : > { %2733 = dma.hbm_to_vmem [thread:$0]  (!%p3495_p8), %s198_s25, 8192, %s200_s4, %s3412_s26, %s3286_s21, %s3286_s21, %s3287_s0  }
  0x59   : > { %211 = sbr.rel (%p3447_p3) target bundleno = 737 (0x2e1), region = 32  ;;  %s213_s29 = sand.u32 (!%p3447_p3), 1, %s3420_s28  }
  0x5a   : > { %s215_s27 = sand.u32 (!%p3447_p3), 1, %s3252_s16   ;;  %s214_s30 = scalar_lea.sflag (!%p3447_p3), [#allocation4], %s213_s29 }
  0x5b   : > { %s2537_s6 = sshll.u32 (!%p3447_p3), %s215_s27, 10 }
  0x5c   : > { %s3508_s19 = scalar_lea.vmem (!%p3447_p3), [#allocation3], %s2537_s6 }
  0x5e   : > { %3219 = dma.done.wait (%p3431_p11), %s214_s30, 16384  }
  0x5f   : > { %3221 = vsyncadd (%p3431_p11), %s214_s30, 4294950912 }
  0x60   : > { %3223 = dma.done.wait (%p55_p7), [#allocation7], 8192  }
  0x61   : > { %3225 = vsyncadd (%p55_p7), [#allocation7], 4294959104  ;;  %s228_s26 = sand.u32 1, %s3240_s13   ;;  %p4022_p3 = scmp.ne.s32.totalorder %s4012_s7, 0 }
  0x62   : > { %s2539_s9 = sshll.u32 %s228_s26, 9 }
  0x63   : > { %s3521_s25 = scalar_lea.vmem [#allocation8], %s2539_s9 }
  0x64   : > { %3227 = dma.done.wait (%p4022_p3), %s214_s30, 8192  }
  0x65   : > { %3229 = vsyncadd (%p4022_p3), %s214_s30, 4294959104  ;;  %s3527_s24 = scalar_lea.vmem [#allocation9], %s2539_s9  ;;  %p2541_p11 = scmp.ne.s32.totalorder %s3260_s18, 0 }
  0x67   : > { %266 = sbr.rel (%p2541_p11) target bundleno = 141 (0x8d), region = 48 }
  0x6c   : > { %v3288_v0 = vmov 0.0  }
  0x6d   : > { %267 = vst [vmem:[#allocation2 + $0xb0] sm:$0xff] %v3288_v0  ;;  %268 = vst [vmem:[#allocation2 + $0x1b0] sm:$0xff] %v3288_v0 }
  0x6e   : > { %269 = vst [vmem:[#allocation2 + $0xd8] sm:$0xff] %v3288_v0  ;;  %270 = vst [vmem:[#allocation2 + $0x18] sm:$0xff] %v3288_v0 }
  0x6f   : > { %271 = vst [vmem:[#allocation2 + $0x50] sm:$0xff] %v3288_v0  ;;  %272 = vst [vmem:[#allocation2 + $0x168] sm:$0xff] %v3288_v0 }
  0x70   : > { %273 = vst [vmem:[#allocation2 + $0x130] sm:$0xff] %v3288_v0  ;;  %274 = vst [vmem:[#allocation2 + $0x48] sm:$0xff] %v3288_v0 }
  0x71   : > { %275 = vst [vmem:[#allocation2 + $0x180] sm:$0xff] %v3288_v0  ;;  %276 = vst [vmem:[#allocation2 + $0x110] sm:$0xff] %v3288_v0 }
  0x72   : > { %277 = vst [vmem:[#allocation2 + $0x118] sm:$0xff] %v3288_v0  ;;  %278 = vst [vmem:[#allocation2 + $0x98] sm:$0xff] %v3288_v0 }
  0x73   : > { %279 = vst [vmem:[#allocation2 + $0x120] sm:$0xff] %v3288_v0  ;;  %280 = vst [vmem:[#allocation2 + $0x150] sm:$0xff] %v3288_v0 }
  0x74   : > { %281 = vst [vmem:[#allocation2 + $0x108] sm:$0xff] %v3288_v0  ;;  %282 = vst [vmem:[#allocation2 + $0x60] sm:$0xff] %v3288_v0 }
  0x75   : > { %283 = vst [vmem:[#allocation2 + $0xe0] sm:$0xff] %v3288_v0  ;;  %284 = vst [vmem:[#allocation2 + $0x188] sm:$0xff] %v3288_v0 }
  0x76   : > { %285 = vst [vmem:[#allocation2 + $0x138] sm:$0xff] %v3288_v0  ;;  %286 = vst [vmem:[#allocation2 + $0x140] sm:$0xff] %v3288_v0 }
  0x77   : > { %287 = vst [vmem:[#allocation2 + $0x80] sm:$0xff] %v3288_v0  ;;  %288 = vst [vmem:[#allocation2 + $0x1a8] sm:$0xff] %v3288_v0 }
  0x78   : > { %289 = vst [vmem:[#allocation2 + $0x1b8] sm:$0xff] %v3288_v0  ;;  %290 = vst [vmem:[#allocation2 + $0x28] sm:$0xff] %v3288_v0 }
  0x79   : > { %291 = vst [vmem:[#allocation2 + $0x1e8] sm:$0xff] %v3288_v0  ;;  %292 = vst [vmem:[#allocation2 + $0xf8] sm:$0xff] %v3288_v0 }
  0x7a   : > { %293 = vst [vmem:[#allocation2 + $0x160] sm:$0xff] %v3288_v0  ;;  %294 = vst [vmem:[#allocation2 + $0x30] sm:$0xff] %v3288_v0 }
  0x7b   : > { %295 = vst [vmem:[#allocation2 + $0x1e0] sm:$0xff] %v3288_v0  ;;  %296 = vst [vmem:[#allocation2] sm:$0xff] %v3288_v0 }
  0x7c   : > { %297 = vst [vmem:[#allocation2 + $0xf0] sm:$0xff] %v3288_v0  ;;  %298 = vst [vmem:[#allocation2 + $0x8] sm:$0xff] %v3288_v0 }
  0x7d   : > { %299 = vst [vmem:[#allocation2 + $0x148] sm:$0xff] %v3288_v0  ;;  %300 = vst [vmem:[#allocation2 + $0x1d0] sm:$0xff] %v3288_v0 }
  0x7e   : > { %301 = vst [vmem:[#allocation2 + $0x100] sm:$0xff] %v3288_v0  ;;  %302 = vst [vmem:[#allocation2 + $0xc8] sm:$0xff] %v3288_v0 }
  0x7f   : > { %303 = vst [vmem:[#allocation2 + $0x40] sm:$0xff] %v3288_v0  ;;  %304 = vst [vmem:[#allocation2 + $0x1f8] sm:$0xff] %v3288_v0 }
  0x80   : > { %305 = vst [vmem:[#allocation2 + $0x20] sm:$0xff] %v3288_v0  ;;  %306 = vst [vmem:[#allocation2 + $0x128] sm:$0xff] %v3288_v0 }
  0x81   : > { %307 = vst [vmem:[#allocation2 + $0x1a0] sm:$0xff] %v3288_v0  ;;  %308 = vst [vmem:[#allocation2 + $0x1f0] sm:$0xff] %v3288_v0 }
  0x82   : > { %309 = vst [vmem:[#allocation2 + $0xe8] sm:$0xff] %v3288_v0  ;;  %310 = vst [vmem:[#allocation2 + $0x78] sm:$0xff] %v3288_v0 }
  0x83   : > { %311 = vst [vmem:[#allocation2 + $0x70] sm:$0xff] %v3288_v0  ;;  %312 = vst [vmem:[#allocation2 + $0x90] sm:$0xff] %v3288_v0 }
  0x84   : > { %313 = vst [vmem:[#allocation2 + $0x1d8] sm:$0xff] %v3288_v0  ;;  %314 = vst [vmem:[#allocation2 + $0xd0] sm:$0xff] %v3288_v0 }
  0x85   : > { %315 = vst [vmem:[#allocation2 + $0xb8] sm:$0xff] %v3288_v0  ;;  %316 = vst [vmem:[#allocation2 + $0x88] sm:$0xff] %v3288_v0 }
  0x86   : > { %317 = vst [vmem:[#allocation2 + $0xa8] sm:$0xff] %v3288_v0  ;;  %318 = vst [vmem:[#allocation2 + $0x1c8] sm:$0xff] %v3288_v0 }
  0x87   : > { %319 = vst [vmem:[#allocation2 + $0x170] sm:$0xff] %v3288_v0  ;;  %320 = vst [vmem:[#allocation2 + $0x178] sm:$0xff] %v3288_v0 }
  0x88   : > { %321 = vst [vmem:[#allocation2 + $0x68] sm:$0xff] %v3288_v0  ;;  %322 = vst [vmem:[#allocation2 + $0x190] sm:$0xff] %v3288_v0 }
  0x89   : > { %323 = vst [vmem:[#allocation2 + $0x198] sm:$0xff] %v3288_v0  ;;  %324 = vst [vmem:[#allocation2 + $0x38] sm:$0xff] %v3288_v0 }
  0x8a   : > { %325 = vst [vmem:[#allocation2 + $0xc0] sm:$0xff] %v3288_v0  ;;  %326 = vst [vmem:[#allocation2 + $0x1c0] sm:$0xff] %v3288_v0 }
  0x8b   : > { %327 = vst [vmem:[#allocation2 + $0x158] sm:$0xff] %v3288_v0  ;;  %328 = vst [vmem:[#allocation2 + $0x10] sm:$0xff] %v3288_v0 }
  0x8c   : > { %329 = vst [vmem:[#allocation2 + $0x58] sm:$0xff] %v3288_v0  ;;  %330 = vst [vmem:[#allocation2 + $0xa0] sm:$0xff] %v3288_v0 }
  0x8d PF: > { %s2542_s28 = sshll.u32 %s3260_s18, 9  ;;  %v3289_v1 = vmov 0   ;;  %v2876_v2 = vld [vmem:[%s3508_s19 + $0x4] ss:$16 sps:$4 sm:$0xff]   ;;  %v2879_v3 = vld [vmem:[%s3508_s19 + $0xc] ss:$16 sps:$4 sm:$0xff]  }
  0x8e   : > { %1424 = vmatprep.subr.bf16.mxu0 %v3289_v1  ;;  %1713 = vmatprep.subr.bf16.mxu1 %v3289_v1  ;;  %s332_s7 = sshra.s32 %s2542_s28, 3  ;;  %v2874_v36 = vld [vmem:[%s3508_s19] ss:$16 sps:$4 sm:$0xff]   ;;  %v2877_v37 = vld [vmem:[%s3508_s19 + $0x8] ss:$16 sps:$4 sm:$0xff]   ;;  %p2704_p7 = scmp.ne.s32.totalorder %s3260_s18, 1 }
  0x8f   : > { %s2543_s11 = sshll.u32 %s332_s7, 2  ;;  %1456 = vmatprep.mubr.bf16.mxu0 %v2876_v2  ;;  %1745 = vmatprep.mubr.bf16.mxu1 %v2879_v3  ;;  %v2880_v38 = vld [vmem:[%s3508_s19 + $0x24] ss:$16 sps:$4 sm:$0xff]   ;;  %v2882_v39 = vld [vmem:[%s3508_s19 + $0x2c] ss:$16 sps:$4 sm:$0xff]  }
  0x90   : > { %s3599_s4 = scalar_lea.vmem [#allocation6], %s2543_s11  ;;  %v2884_v40 = vld [vmem:[%s3508_s19 + $0x20] ss:$16 sps:$4 sm:$0xff]   ;;  %v2885_v41 = vld [vmem:[%s3508_s19 + $0x28] ss:$16 sps:$4 sm:$0xff]  }
  0x91   : > { %v2842_v4 = vld [vmem:[%s3599_s4 + $0x38] sm:$0xff]   ;;  %v2844_v6 = vld [vmem:[%s3599_s4 + $0x30] sm:$0xff]   ;;  %v2846_v8 = vld [vmem:[%s3599_s4 + $0x28] sm:$0xff]  }
  0x92   : > { %v2843_v5 = vld [vmem:[%s3599_s4 + $0xb8] sm:$0xff]   ;;  %1425 = vmatpush1.bf16.msra.mxu0 %v2842_v4  ;;  %v2845_v7 = vld [vmem:[%s3599_s4 + $0xb0] sm:$0xff]   ;;  %v2847_v9 = vld [vmem:[%s3599_s4 + $0xa8] sm:$0xff]  }
  0x93   : > { %1714 = vmatpush1.bf16.msra.mxu1 %v2843_v5  ;;  %1426 = vmatprep.subr.bf16.mxu0 %v3289_v1  ;;  %v2848_v10 = vld [vmem:[%s3599_s4 + $0x20] sm:$0xff]   ;;  %v2850_v12 = vld [vmem:[%s3599_s4 + $0x18] sm:$0xff]   ;;  %v2852_v14 = vld [vmem:[%s3599_s4 + $0x10] sm:$0xff]  }
  0x94   : > { %1715 = vmatprep.subr.bf16.mxu1 %v3289_v1  ;;  %v2849_v11 = vld [vmem:[%s3599_s4 + $0xa0] sm:$0xff]   ;;  %v2851_v13 = vld [vmem:[%s3599_s4 + $0x98] sm:$0xff]   ;;  %v2853_v15 = vld [vmem:[%s3599_s4 + $0x90] sm:$0xff]  }
  0x95   : > { %v2854_v16 = vld [vmem:[%s3599_s4 + $0x8] sm:$0xff]   ;;  %v2856_v18 = vld [vmem:[%s3599_s4] sm:$0xff]   ;;  %v2858_v20 = vld [vmem:[%s3599_s4 + $0x78] sm:$0xff]  }
  0x96   : > { %1427 = vmatpush1.bf16.msra.mxu0 %v2844_v6  ;;  %v2855_v17 = vld [vmem:[%s3599_s4 + $0x88] sm:$0xff]   ;;  %v2857_v19 = vld [vmem:[%s3599_s4 + $0x80] sm:$0xff]   ;;  %v2859_v21 = vld [vmem:[%s3599_s4 + $0xf8] sm:$0xff]  }
  0x97   : > { %1716 = vmatpush1.bf16.msra.mxu1 %v2845_v7  ;;  %1428 = vmatprep.subr.bf16.mxu0 %v3289_v1  ;;  %v2860_v22 = vld [vmem:[%s3599_s4 + $0x70] sm:$0xff]   ;;  %v2862_v24 = vld [vmem:[%s3599_s4 + $0x68] sm:$0xff]   ;;  %v2864_v26 = vld [vmem:[%s3599_s4 + $0x60] sm:$0xff]  }
  0x98   : > { %1717 = vmatprep.subr.bf16.mxu1 %v3289_v1  ;;  %v2861_v23 = vld [vmem:[%s3599_s4 + $0xf0] sm:$0xff]   ;;  %v2863_v25 = vld [vmem:[%s3599_s4 + $0xe8] sm:$0xff]   ;;  %v2865_v27 = vld [vmem:[%s3599_s4 + $0xe0] sm:$0xff]  }
  0x99   : > { %v2866_v28 = vld [vmem:[%s3599_s4 + $0x58] sm:$0xff]   ;;  %v2868_v30 = vld [vmem:[%s3599_s4 + $0x50] sm:$0xff]   ;;  %v2870_v32 = vld [vmem:[%s3599_s4 + $0x48] sm:$0xff]  }
  0x9a   : > { %1429 = vmatpush1.bf16.msra.mxu0 %v2846_v8  ;;  %v2867_v29 = vld [vmem:[%s3599_s4 + $0xd8] sm:$0xff]   ;;  %v2869_v31 = vld [vmem:[%s3599_s4 + $0xd0] sm:$0xff]   ;;  %v2871_v33 = vld [vmem:[%s3599_s4 + $0xc8] sm:$0xff]  }
  0x9b   : > { %1718 = vmatpush1.bf16.msra.mxu1 %v2847_v9  ;;  %1430 = vmatprep.subr.bf16.mxu0 %v3289_v1  ;;  %v2872_v34 = vld [vmem:[%s3599_s4 + $0x40] sm:$0xff]   ;;  %v2888_v43 = vld [vmem:[%s3508_s19 + $0x4c] ss:$16 sps:$4 sm:$0xff]   ;;  %v2891_v45 = vld [vmem:[%s3508_s19 + $0x48] ss:$16 sps:$4 sm:$0xff]  }
  0x9c   : > { %1719 = vmatprep.subr.bf16.mxu1 %v3289_v1  ;;  %v2873_v35 = vld [vmem:[%s3599_s4 + $0xc0] sm:$0xff]   ;;  %v2894_v47 = vld [vmem:[%s3508_s19 + $0x6c] ss:$16 sps:$4 sm:$0xff]   ;;  %v2897_v49 = vld [vmem:[%s3508_s19 + $0x68] ss:$16 sps:$4 sm:$0xff]  }
  0x9d   : > { %v2886_v42 = vld [vmem:[%s3508_s19 + $0x44] ss:$16 sps:$4 sm:$0xff]   ;;  %v2890_v44 = vld [vmem:[%s3508_s19 + $0x40] ss:$16 sps:$4 sm:$0xff]   ;;  %v2900_v51 = vld [vmem:[%s3508_s19 + $0x8c] ss:$16 sps:$4 sm:$0xff]  }
  0x9e   : > { %1431 = vmatpush1.bf16.msra.mxu0 %v2848_v10  ;;  %v2892_v46 = vld [vmem:[%s3508_s19 + $0x64] ss:$16 sps:$4 sm:$0xff]   ;;  %v2896_v48 = vld [vmem:[%s3508_s19 + $0x60] ss:$16 sps:$4 sm:$0xff]   ;;  %v2903_v53 = vld [vmem:[%s3508_s19 + $0x88] ss:$16 sps:$4 sm:$0xff]  }
  0x9f   : > { %1720 = vmatpush1.bf16.msra.mxu1 %v2849_v11  ;;  %1432 = vmatprep.subr.bf16.mxu0 %v3289_v1  ;;  %v2898_v50 = vld [vmem:[%s3508_s19 + $0x84] ss:$16 sps:$4 sm:$0xff]   ;;  %v2902_v52 = vld [vmem:[%s3508_s19 + $0x80] ss:$16 sps:$4 sm:$0xff]   ;;  %v2906_v55 = vld [vmem:[%s3508_s19 + $0xac] ss:$16 sps:$4 sm:$0xff]  }
  0xa0   : > { %1721 = vmatprep.subr.bf16.mxu1 %v3289_v1  ;;  %v2904_v54 = vld [vmem:[%s3508_s19 + $0xa4] ss:$16 sps:$4 sm:$0xff]   ;;  %v2908_v56 = vld [vmem:[%s3508_s19 + $0xa0] ss:$16 sps:$4 sm:$0xff]   ;;  %v2909_v57 = vld [vmem:[%s3508_s19 + $0xa8] ss:$16 sps:$4 sm:$0xff]  }
  0xa1   : > { %v2910_v58 = vld [vmem:[%s3508_s19 + $0xc4] ss:$16 sps:$4 sm:$0xff]   ;;  %v2912_v59 = vld [vmem:[%s3508_s19 + $0xcc] ss:$16 sps:$4 sm:$0xff]   ;;  %v2914_v60 = vld [vmem:[%s3508_s19 + $0xc0] ss:$16 sps:$4 sm:$0xff]  }
  0xa2   : > { %1433 = vmatpush1.bf16.msra.mxu0 %v2850_v12  ;;  %v2915_v61 = vld [vmem:[%s3508_s19 + $0xc8] ss:$16 sps:$4 sm:$0xff]   ;;  %v2916_v62 = vld [vmem:[%s3508_s19 + $0xe4] ss:$16 sps:$4 sm:$0xff]   ;;  %v2918_v63 = vld [vmem:[%s3508_s19 + $0xec] ss:$16 sps:$4 sm:$0xff]  }
  0xa3   : > { %1722 = vmatpush1.bf16.msra.mxu1 %v2851_v13  ;;  %1434 = vmatprep.subr.bf16.mxu0 %v3289_v1  ;;  %v2920_v0 = vld [vmem:[%s3508_s19 + $0xe0] ss:$16 sps:$4 sm:$0xff]   ;;  %v2922_v2 = vld [vmem:[%s3508_s19 + $0x104] ss:$16 sps:$4 sm:$0xff]   ;;  %v2924_v3 = vld [vmem:[%s3508_s19 + $0x10c] ss:$16 sps:$4 sm:$0xff]  }
  0xa4   : > { %1723 = vmatprep.subr.bf16.mxu1 %v3289_v1  ;;  %v2926_v4 = vld [vmem:[%s3508_s19 + $0x100] ss:$16 sps:$4 sm:$0xff]   ;;  %v2927_v5 = vld [vmem:[%s3508_s19 + $0x108] ss:$16 sps:$4 sm:$0xff]   ;;  %v2928_v6 = vld [vmem:[%s3508_s19 + $0x124] ss:$16 sps:$4 sm:$0xff]  }
  0xa5   : > { %v2930_v7 = vld [vmem:[%s3508_s19 + $0x12c] ss:$16 sps:$4 sm:$0xff]   ;;  %v2932_v8 = vld [vmem:[%s3508_s19 + $0x120] ss:$16 sps:$4 sm:$0xff]   ;;  %v2933_v9 = vld [vmem:[%s3508_s19 + $0x128] ss:$16 sps:$4 sm:$0xff]  }
  0xa6   : > { %1435 = vmatpush1.bf16.msra.mxu0 %v2852_v14  ;;  %v2934_v10 = vld [vmem:[%s3508_s19 + $0x144] ss:$16 sps:$4 sm:$0xff]   ;;  %v2936_v11 = vld [vmem:[%s3508_s19 + $0x14c] ss:$16 sps:$4 sm:$0xff]   ;;  %v2938_v12 = vld [vmem:[%s3508_s19 + $0x140] ss:$16 sps:$4 sm:$0xff]  }
  0xa7   : > { %1724 = vmatpush1.bf16.msra.mxu1 %v2853_v15  ;;  %1436 = vmatprep.subr.bf16.mxu0 %v3289_v1  ;;  %v2939_v13 = vld [vmem:[%s3508_s19 + $0x148] ss:$16 sps:$4 sm:$0xff]   ;;  %v2940_v14 = vld [vmem:[%s3508_s19 + $0x164] ss:$16 sps:$4 sm:$0xff]   ;;  %v2942_v15 = vld [vmem:[%s3508_s19 + $0x16c] ss:$16 sps:$4 sm:$0xff]  }
  0xa8   : > { %1725 = vmatprep.subr.bf16.mxu1 %v3289_v1 }
  0xaa   : > { %1437 = vmatpush1.bf16.msra.mxu0 %v2854_v16  ;;  %v2944_v16 = vld [vmem:[%s3508_s19 + $0x160] ss:$16 sps:$4 sm:$0xff]  }
  0xab   : > { %1726 = vmatpush1.bf16.msra.mxu1 %v2855_v17  ;;  %1438 = vmatprep.subr.bf16.mxu0 %v3289_v1  ;;  %v2945_v17 = vld [vmem:[%s3508_s19 + $0x168] ss:$16 sps:$4 sm:$0xff]  }
  0xac   : > { %1727 = vmatprep.subr.bf16.mxu1 %v3289_v1 }
  0xae   : > { %1439 = vmatpush1.bf16.msra.mxu0 %v2856_v18  ;;  %v2946_v18 = vld [vmem:[%s3508_s19 + $0x184] ss:$16 sps:$4 sm:$0xff]  }
  0xaf   : > { %1728 = vmatpush1.bf16.msra.mxu1 %v2857_v19  ;;  %1440 = vmatprep.subr.bf16.mxu0 %v3289_v1  ;;  %v2948_v19 = vld [vmem:[%s3508_s19 + $0x18c] ss:$16 sps:$4 sm:$0xff]  }
  0xb0   : > { %1729 = vmatprep.subr.bf16.mxu1 %v3289_v1 }
  0xb2   : > { %1441 = vmatpush2.bf16.msra.mxu0 %v2858_v20  ;;  %v2950_v20 = vld [vmem:[%s3508_s19 + $0x180] ss:$16 sps:$4 sm:$0xff]  }
  0xb3   : > { %1730 = vmatpush2.bf16.msra.mxu1 %v2859_v21  ;;  %1442 = vmatprep.subr.bf16.mxu0 %v3289_v1  ;;  %v2951_v21 = vld [vmem:[%s3508_s19 + $0x188] ss:$16 sps:$4 sm:$0xff]  }
  0xb4   : > { %1731 = vmatprep.subr.bf16.mxu1 %v3289_v1 }
  0xb6   : > { %1443 = vmatpush2.bf16.msra.mxu0 %v2860_v22  ;;  %v2952_v22 = vld [vmem:[%s3508_s19 + $0x1a4] ss:$16 sps:$4 sm:$0xff]  }
  0xb7   : > { %1732 = vmatpush2.bf16.msra.mxu1 %v2861_v23  ;;  %1444 = vmatprep.subr.bf16.mxu0 %v3289_v1  ;;  %v2954_v23 = vld [vmem:[%s3508_s19 + $0x1ac] ss:$16 sps:$4 sm:$0xff]  }
  0xb8   : > { %1733 = vmatprep.subr.bf16.mxu1 %v3289_v1 }
  0xba   : > { %1445 = vmatpush2.bf16.msra.mxu0 %v2862_v24  ;;  %v2956_v24 = vld [vmem:[%s3508_s19 + $0x1a0] ss:$16 sps:$4 sm:$0xff]  }
  0xbb   : > { %1734 = vmatpush2.bf16.msra.mxu1 %v2863_v25  ;;  %1446 = vmatprep.subr.bf16.mxu0 %v3289_v1  ;;  %v2957_v25 = vld [vmem:[%s3508_s19 + $0x1a8] ss:$16 sps:$4 sm:$0xff]  }
  0xbc   : > { %1735 = vmatprep.subr.bf16.mxu1 %v3289_v1 }
  0xbe   : > { %1447 = vmatpush2.bf16.msra.mxu0 %v2864_v26  ;;  %v2958_v26 = vld [vmem:[%s3508_s19 + $0x1c4] ss:$16 sps:$4 sm:$0xff]  }
  0xbf   : > { %1736 = vmatpush2.bf16.msra.mxu1 %v2865_v27  ;;  %1448 = vmatprep.subr.bf16.mxu0 %v3289_v1  ;;  %v2960_v27 = vld [vmem:[%s3508_s19 + $0x1cc] ss:$16 sps:$4 sm:$0xff]  }
  0xc0   : > { %1737 = vmatprep.subr.bf16.mxu1 %v3289_v1 }
  0xc2   : > { %1449 = vmatpush2.bf16.msra.mxu0 %v2866_v28  ;;  %v2962_v28 = vld [vmem:[%s3508_s19 + $0x1c0] ss:$16 sps:$4 sm:$0xff]  }
  0xc3   : > { %1738 = vmatpush2.bf16.msra.mxu1 %v2867_v29  ;;  %1450 = vmatprep.subr.bf16.mxu0 %v3289_v1  ;;  %v2963_v29 = vld [vmem:[%s3508_s19 + $0x1c8] ss:$16 sps:$4 sm:$0xff]  }
  0xc4   : > { %1739 = vmatprep.subr.bf16.mxu1 %v3289_v1 }
  0xc6   : > { %1451 = vmatpush2.bf16.msra.mxu0 %v2868_v30  ;;  %v2964_v30 = vld [vmem:[%s3508_s19 + $0x1e4] ss:$16 sps:$4 sm:$0xff]  }
  0xc7   : > { %1740 = vmatpush2.bf16.msra.mxu1 %v2869_v31  ;;  %1452 = vmatprep.subr.bf16.mxu0 %v3289_v1  ;;  %v2966_v31 = vld [vmem:[%s3508_s19 + $0x1ec] ss:$16 sps:$4 sm:$0xff]  }
  0xc8   : > { %1741 = vmatprep.subr.bf16.mxu1 %v3289_v1 }
  0xca   : > { %1453 = vmatpush2.bf16.msra.mxu0 %v2870_v32  ;;  %v2968_v32 = vld [vmem:[%s3508_s19 + $0x1e0] ss:$16 sps:$4 sm:$0xff]  }
  0xcb   : > { %1742 = vmatpush2.bf16.msra.mxu1 %v2871_v33  ;;  %1454 = vmatprep.subr.bf16.mxu0 %v3289_v1  ;;  %v2969_v33 = vld [vmem:[%s3508_s19 + $0x1e8] ss:$16 sps:$4 sm:$0xff]  }
  0xcc   : > { %1743 = vmatprep.subr.bf16.mxu1 %v3289_v1  ;;  %v2921_v1 = vld [vmem:[%s3508_s19 + $0xe8] ss:$16 sps:$4 sm:$0xff]  }
  0xce   : > { %1455 = vmatpush2.bf16.msra.mxu0 %v2872_v34  ;;  %v2970_v34 = vld [vmem:[%s3508_s19 + $0x204] ss:$16 sps:$4 sm:$0xff]  }
  0xcf   : > { %1744 = vmatpush2.bf16.msra.mxu1 %v2873_v35  ;;  %v2972_v35 = vld [vmem:[%s3508_s19 + $0x20c] ss:$16 sps:$4 sm:$0xff]  }
  0xd1   : > { %1457 = vmatmul.mubr.bf16.vlgmr.msra.gmra.mxu0 %v2874_v36  ;;  %v2974_v36 = vld [vmem:[%s3508_s19 + $0x200] ss:$16 sps:$4 sm:$0xff]  }
  0xd2   : > { %1746 = vmatmul.mubr.bf16.vlgmr.msra.gmra.mxu1 %v2877_v37  ;;  %1464 = vmatprep.mubr.bf16.mxu0 %v2880_v38  ;;  %v2975_v37 = vld [vmem:[%s3508_s19 + $0x208] ss:$16 sps:$4 sm:$0xff]   ;;  %v2976_v38 = vld [vmem:[%s3508_s19 + $0x224] ss:$16 sps:$4 sm:$0xff]  }
  0xd3   : > { %1753 = vmatprep.mubr.bf16.mxu1 %v2882_v39  ;;  %v2978_v39 = vld [vmem:[%s3508_s19 + $0x22c] ss:$16 sps:$4 sm:$0xff]  }
  0xd9   : > { %1465 = vmatmul.mubr.bf16.gmra.mxu0 %v2884_v40  ;;  %v2980_v40 = vld [vmem:[%s3508_s19 + $0x220] ss:$16 sps:$4 sm:$0xff]  }
  0xda   : > { %1754 = vmatmul.mubr.bf16.gmra.mxu1 %v2885_v41  ;;  %1472 = vmatprep.mubr.bf16.mxu0 %v2886_v42  ;;  %v2981_v41 = vld [vmem:[%s3508_s19 + $0x228] ss:$16 sps:$4 sm:$0xff]   ;;  %v2982_v42 = vld [vmem:[%s3508_s19 + $0x244] ss:$16 sps:$4 sm:$0xff]  }
  0xdb   : > { %1761 = vmatprep.mubr.bf16.mxu1 %v2888_v43  ;;  %v2984_v43 = vld [vmem:[%s3508_s19 + $0x24c] ss:$16 sps:$4 sm:$0xff]  }
  0xe1   : > { %1473 = vmatmul.mubr.bf16.gmra.mxu0 %v2890_v44  ;;  %v2986_v44 = vld [vmem:[%s3508_s19 + $0x240] ss:$16 sps:$4 sm:$0xff]  }
  0xe2   : > { %1762 = vmatmul.mubr.bf16.gmra.mxu1 %v2891_v45  ;;  %1480 = vmatprep.mubr.bf16.mxu0 %v2892_v46  ;;  %v2987_v45 = vld [vmem:[%s3508_s19 + $0x248] ss:$16 sps:$4 sm:$0xff]   ;;  %v2988_v46 = vld [vmem:[%s3508_s19 + $0x264] ss:$16 sps:$4 sm:$0xff]  }
  0xe3   : > { %1769 = vmatprep.mubr.bf16.mxu1 %v2894_v47  ;;  %v2990_v47 = vld [vmem:[%s3508_s19 + $0x26c] ss:$16 sps:$4 sm:$0xff]  }
  0xe9   : > { %1481 = vmatmul.mubr.bf16.gmra.mxu0 %v2896_v48  ;;  %v2992_v48 = vld [vmem:[%s3508_s19 + $0x260] ss:$16 sps:$4 sm:$0xff]  }
  0xea   : > { %1770 = vmatmul.mubr.bf16.gmra.mxu1 %v2897_v49  ;;  %1488 = vmatprep.mubr.bf16.mxu0 %v2898_v50  ;;  %v2993_v49 = vld [vmem:[%s3508_s19 + $0x268] ss:$16 sps:$4 sm:$0xff]   ;;  %v2994_v50 = vld [vmem:[%s3508_s19 + $0x284] ss:$16 sps:$4 sm:$0xff]  }
  0xeb   : > { %1777 = vmatprep.mubr.bf16.mxu1 %v2900_v51  ;;  %v2996_v51 = vld [vmem:[%s3508_s19 + $0x28c] ss:$16 sps:$4 sm:$0xff]  }
  0xf1   : > { %1489 = vmatmul.mubr.bf16.gmra.mxu0 %v2902_v52  ;;  %v2998_v52 = vld [vmem:[%s3508_s19 + $0x280] ss:$16 sps:$4 sm:$0xff]  }
  0xf2   : > { %1778 = vmatmul.mubr.bf16.gmra.mxu1 %v2903_v53  ;;  %1496 = vmatprep.mubr.bf16.mxu0 %v2904_v54  ;;  %v2999_v53 = vld [vmem:[%s3508_s19 + $0x288] ss:$16 sps:$4 sm:$0xff]   ;;  %v3000_v54 = vld [vmem:[%s3508_s19 + $0x2a4] ss:$16 sps:$4 sm:$0xff]  }
  0xf3   : > { %1785 = vmatprep.mubr.bf16.mxu1 %v2906_v55  ;;  %v3002_v55 = vld [vmem:[%s3508_s19 + $0x2ac] ss:$16 sps:$4 sm:$0xff]  }
  0xf9   : > { %1497 = vmatmul.mubr.bf16.gmra.mxu0 %v2908_v56  ;;  %v3004_v56 = vld [vmem:[%s3508_s19 + $0x2a0] ss:$16 sps:$4 sm:$0xff]  }
  0xfa   : > { %1786 = vmatmul.mubr.bf16.gmra.mxu1 %v2909_v57  ;;  %1504 = vmatprep.mubr.bf16.mxu0 %v2910_v58  ;;  %v3005_v57 = vld [vmem:[%s3508_s19 + $0x2a8] ss:$16 sps:$4 sm:$0xff]   ;;  %v3006_v58 = vld [vmem:[%s3508_s19 + $0x2c4] ss:$16 sps:$4 sm:$0xff]  }
  0xfb   : > { %1793 = vmatprep.mubr.bf16.mxu1 %v2912_v59  ;;  %v3008_v59 = vld [vmem:[%s3508_s19 + $0x2cc] ss:$16 sps:$4 sm:$0xff]  }
 0x101   : > { %1505 = vmatmul.mubr.bf16.gmra.mxu0 %v2914_v60  ;;  %v3010_v60 = vld [vmem:[%s3508_s19 + $0x2c0] ss:$16 sps:$4 sm:$0xff]  }
 0x102   : > { %1794 = vmatmul.mubr.bf16.gmra.mxu1 %v2915_v61  ;;  %1512 = vmatprep.mubr.bf16.mxu0 %v2916_v62  ;;  %v3011_v61 = vld [vmem:[%s3508_s19 + $0x2c8] ss:$16 sps:$4 sm:$0xff]   ;;  %v3012_v62 = vld [vmem:[%s3508_s19 + $0x2e4] ss:$16 sps:$4 sm:$0xff]  }
 0x103   : > { %1801 = vmatprep.mubr.bf16.mxu1 %v2918_v63  ;;  %v3014_v63 = vld [vmem:[%s3508_s19 + $0x2ec] ss:$16 sps:$4 sm:$0xff]  }
 0x109   : > { %1513 = vmatmul.mubr.bf16.gmra.mxu0 %v2920_v0  ;;  %v3016_v0 = vld [vmem:[%s3508_s19 + $0x2e0] ss:$16 sps:$4 sm:$0xff]  }
 0x10a   : > { %1802 = vmatmul.mubr.bf16.gmra.mxu1 %v2921_v1  ;;  %1520 = vmatprep.mubr.bf16.mxu0 %v2922_v2  ;;  %v3017_v1 = vld [vmem:[%s3508_s19 + $0x2e8] ss:$16 sps:$4 sm:$0xff]   ;;  %v3018_v2 = vld [vmem:[%s3508_s19 + $0x304] ss:$16 sps:$4 sm:$0xff]  }
 0x10b   : > { %1809 = vmatprep.mubr.bf16.mxu1 %v2924_v3  ;;  %v3020_v3 = vld [vmem:[%s3508_s19 + $0x30c] ss:$16 sps:$4 sm:$0xff]  }
 0x111   : > { %1521 = vmatmul.mubr.bf16.gmra.mxu0 %v2926_v4  ;;  %v3022_v4 = vld [vmem:[%s3508_s19 + $0x300] ss:$16 sps:$4 sm:$0xff]  }
 0x112   : > { %1810 = vmatmul.mubr.bf16.gmra.mxu1 %v2927_v5  ;;  %1528 = vmatprep.mubr.bf16.mxu0 %v2928_v6  ;;  %v3023_v5 = vld [vmem:[%s3508_s19 + $0x308] ss:$16 sps:$4 sm:$0xff]   ;;  %v3024_v6 = vld [vmem:[%s3508_s19 + $0x324] ss:$16 sps:$4 sm:$0xff]  }
 0x113   : > { %1817 = vmatprep.mubr.bf16.mxu1 %v2930_v7  ;;  %v3026_v7 = vld [vmem:[%s3508_s19 + $0x32c] ss:$16 sps:$4 sm:$0xff]  }
 0x119   : > { %1529 = vmatmul.mubr.bf16.gmra.mxu0 %v2932_v8 }
 0x11a   : > { %1818 = vmatmul.mubr.bf16.gmra.mxu1 %v2933_v9  ;;  %1536 = vmatprep.mubr.bf16.mxu0 %v2934_v10  ;;  %v400_v9 = vld [vmem:[#allocation2 + $0xb0] sm:$0xff] }
 0x11b   : > { %1825 = vmatprep.mubr.bf16.mxu1 %v2936_v11 }
 0x121   : > { %1537 = vmatmul.mubr.bf16.gmra.mxu0 %v2938_v12 }
 0x122   : > { %1826 = vmatmul.mubr.bf16.gmra.mxu1 %v2939_v13  ;;  %1544 = vmatprep.mubr.bf16.mxu0 %v2940_v14 }
 0x123   : > { %1833 = vmatprep.mubr.bf16.mxu1 %v2942_v15 }
 0x129   : > { %1545 = vmatmul.mubr.bf16.gmra.mxu0 %v2944_v16  ;;  %v3028_v16 = vld [vmem:[%s3508_s19 + $0x320] ss:$16 sps:$4 sm:$0xff]  }
 0x12a   : > { %1834 = vmatmul.mubr.bf16.gmra.mxu1 %v2945_v17  ;;  %1552 = vmatprep.mubr.bf16.mxu0 %v2946_v18  ;;  %v401_v17 = vld [vmem:[#allocation2 + $0x1b0] sm:$0xff] }
 0x12b   : > { %1841 = vmatprep.mubr.bf16.mxu1 %v2948_v19  ;;  %v3029_v19 = vld [vmem:[%s3508_s19 + $0x328] ss:$16 sps:$4 sm:$0xff]  }
 0x131   : > { %1553 = vmatmul.mubr.bf16.gmra.mxu0 %v2950_v20  ;;  %v3030_v20 = vld [vmem:[%s3508_s19 + $0x344] ss:$16 sps:$4 sm:$0xff]  }
 0x132   : > { %1842 = vmatmul.mubr.bf16.gmra.mxu1 %v2951_v21  ;;  %1560 = vmatprep.mubr.bf16.mxu0 %v2952_v22 }
 0x133   : > { %1849 = vmatprep.mubr.bf16.mxu1 %v2954_v23  ;;  %v3032_v23 = vld [vmem:[%s3508_s19 + $0x34c] ss:$16 sps:$4 sm:$0xff]  }
 0x139   : > { %1561 = vmatmul.mubr.bf16.gmra.mxu0 %v2956_v24 }
 0x13a   : > { %1850 = vmatmul.mubr.bf16.gmra.mxu1 %v2957_v25  ;;  %1568 = vmatprep.mubr.bf16.mxu0 %v2958_v26 }
 0x13b   : > { %1857 = vmatprep.mubr.bf16.mxu1 %v2960_v27  ;;  %v402_v27 = vld [vmem:[#allocation2 + $0xd8] sm:$0xff] }
 0x141   : > { %1569 = vmatmul.mubr.bf16.gmra.mxu0 %v2962_v28 }
 0x142   : > { %1858 = vmatmul.mubr.bf16.gmra.mxu1 %v2963_v29  ;;  %1576 = vmatprep.mubr.bf16.mxu0 %v2964_v30 }
 0x143   : > { %1865 = vmatprep.mubr.bf16.mxu1 %v2966_v31 }
 0x149   : > { %1577 = vmatmul.mubr.bf16.gmra.mxu0 %v2968_v32 }
 0x14a   : > { %1866 = vmatmul.mubr.bf16.gmra.mxu1 %v2969_v33  ;;  %1584 = vmatprep.mubr.bf16.mxu0 %v2970_v34  ;;  %v3034_v34 = vld [vmem:[%s3508_s19 + $0x340] ss:$16 sps:$4 sm:$0xff]  }
 0x14b   : > { %1873 = vmatprep.mubr.bf16.mxu1 %v2972_v35  ;;  %v403_v35 = vld [vmem:[#allocation2 + $0x18] sm:$0xff] }
 0x151   : > { %1585 = vmatmul.mubr.bf16.gmra.mxu0 %v2974_v36 }
 0x152   : > { %1874 = vmatmul.mubr.bf16.gmra.mxu1 %v2975_v37  ;;  %1592 = vmatprep.mubr.bf16.mxu0 %v2976_v38  ;;  %v3035_v37 = vld [vmem:[%s3508_s19 + $0x348] ss:$16 sps:$4 sm:$0xff]   ;;  %v3036_v38 = vld [vmem:[%s3508_s19 + $0x364] ss:$16 sps:$4 sm:$0xff]  }
 0x153   : > { %1881 = vmatprep.mubr.bf16.mxu1 %v2978_v39 }
 0x159   : > { %1593 = vmatmul.mubr.bf16.gmra.mxu0 %v2980_v40 }
 0x15a   : > { %1882 = vmatmul.mubr.bf16.gmra.mxu1 %v2981_v41  ;;  %1600 = vmatprep.mubr.bf16.mxu0 %v2982_v42  ;;  %v3038_v41 = vld [vmem:[%s3508_s19 + $0x36c] ss:$16 sps:$4 sm:$0xff]  }
 0x15b   : > { %1889 = vmatprep.mubr.bf16.mxu1 %v2984_v43 }
 0x161   : > { %1601 = vmatmul.mubr.bf16.gmra.mxu0 %v2986_v44 }
 0x162   : > { %1890 = vmatmul.mubr.bf16.gmra.mxu1 %v2987_v45  ;;  %1608 = vmatprep.mubr.bf16.mxu0 %v2988_v46  ;;  %v404_v45 = vld [vmem:[#allocation2 + $0x50] sm:$0xff] }
 0x163   : > { %1897 = vmatprep.mubr.bf16.mxu1 %v2990_v47 }
 0x169   : > { %1609 = vmatmul.mubr.bf16.gmra.mxu0 %v2992_v48 }
 0x16a   : > { %1898 = vmatmul.mubr.bf16.gmra.mxu1 %v2993_v49  ;;  %1616 = vmatprep.mubr.bf16.mxu0 %v2994_v50 }
 0x16b   : > { %1905 = vmatprep.mubr.bf16.mxu1 %v2996_v51 }
 0x171   : > { %1617 = vmatmul.mubr.bf16.gmra.mxu0 %v2998_v52  ;;  %v3040_v52 = vld [vmem:[%s3508_s19 + $0x360] ss:$16 sps:$4 sm:$0xff]  }
 0x172   : > { %1906 = vmatmul.mubr.bf16.gmra.mxu1 %v2999_v53  ;;  %1624 = vmatprep.mubr.bf16.mxu0 %v3000_v54  ;;  %v405_v53 = vld [vmem:[#allocation2 + $0x168] sm:$0xff] }
 0x173   : > { %1913 = vmatprep.mubr.bf16.mxu1 %v3002_v55  ;;  %v3041_v55 = vld [vmem:[%s3508_s19 + $0x368] ss:$16 sps:$4 sm:$0xff]  }
 0x179   : > { %1625 = vmatmul.mubr.bf16.gmra.mxu0 %v3004_v56  ;;  %v3044_v56 = vld [vmem:[%s3508_s19 + $0x384] ss:$16 sps:$4 sm:$0xff]  }
 0x17a   : > { %1914 = vmatmul.mubr.bf16.gmra.mxu1 %v3005_v57  ;;  %1632 = vmatprep.mubr.bf16.mxu0 %v3006_v58 }
 0x17b   : > { %1921 = vmatprep.mubr.bf16.mxu1 %v3008_v59  ;;  %v3047_v59 = vld [vmem:[%s3508_s19 + $0x38c] ss:$16 sps:$4 sm:$0xff]  }
 0x181   : > { %1633 = vmatmul.mubr.bf16.gmra.mxu0 %v3010_v60 }
 0x182   : > { %1922 = vmatmul.mubr.bf16.gmra.mxu1 %v3011_v61  ;;  %1640 = vmatprep.mubr.bf16.mxu0 %v3012_v62 }
 0x183   : > { %1929 = vmatprep.mubr.bf16.mxu1 %v3014_v63  ;;  %v406_v63 = vld [vmem:[#allocation2 + $0x130] sm:$0xff] }
 0x189   : > { %1641 = vmatmul.mubr.bf16.gmra.mxu0 %v3016_v0 }
 0x18a   : > { %1930 = vmatmul.mubr.bf16.gmra.mxu1 %v3017_v1  ;;  %1648 = vmatprep.mubr.bf16.mxu0 %v3018_v2 }
 0x18b   : > { %1937 = vmatprep.mubr.bf16.mxu1 %v3020_v3 }
 0x191   : > { %v1458_v8 = vpop.f32.mrf.mxu0  ;;  %1649 = vmatmul.mubr.bf16.gmra.mxu0 %v3022_v4 }
 0x192   : > { %v1747_v10 = vpop.f32.mrf.mxu1  ;;  %1938 = vmatmul.mubr.bf16.gmra.mxu1 %v3023_v5  ;;  %1656 = vmatprep.mubr.bf16.mxu0 %v3024_v6  ;;  %v3042_v6 = vld [vmem:[%s3508_s19 + $0x380] ss:$16 sps:$4 sm:$0xff]  }
 0x193   : > { %v1748_v11 = vadd.f32 %v1747_v10, %v1458_v8  ;;  %v1460_v12 = vpop.f32.mrf.mxu0  ;;  %1945 = vmatprep.mubr.bf16.mxu1 %v3026_v7  ;;  %v407_v7 = vld [vmem:[#allocation2 + $0x48] sm:$0xff]  ;;  %v3050_v10 = vld [vmem:[%s3508_s19 + $0x3a4] ss:$16 sps:$4 sm:$0xff]  }
 0x194   : > { %v1749_v13 = vpop.f32.mrf.mxu1 }
 0x195   : > { %v2002_v14 = vadd.f32 %v1748_v11, %v400_v9  ;;  %v1461_v15 = vpop.f32.mrf.mxu0  ;;  %v3045_v9 = vld [vmem:[%s3508_s19 + $0x388] ss:$16 sps:$4 sm:$0xff]   ;;  %v3053_v13 = vld [vmem:[%s3508_s19 + $0x3ac] ss:$16 sps:$4 sm:$0xff]  }
 0x196   : > { %v1750_v18 = vpop.f32.mrf.mxu1 }
 0x197   : > { %2066 = vst [vmem:[#allocation2 + $0xb0] sm:$0xff] %v2002_v14  ;;  %v1751_v21 = vadd.f32 %v1750_v18, %v1461_v15  ;;  %v1463_v22 = vpop.f32.mrf.mxu0 }
 0x198   : > { %v1752_v24 = vpop.f32.mrf.mxu1 }
 0x199   : > { %v2003_v25 = vadd.f32 %v1751_v21, %v401_v17  ;;  %v1466_v26 = vpop.f32.mrf.mxu0  ;;  %1657 = vmatmul.mubr.bf16.gmra.mxu0 %v3028_v16  ;;  %v408_v17 = vld [vmem:[#allocation2 + $0x180] sm:$0xff] }
 0x19a   : > { %v1755_v28 = vpop.f32.mrf.mxu1  ;;  %1946 = vmatmul.mubr.bf16.gmra.mxu1 %v3029_v19  ;;  %1664 = vmatprep.mubr.bf16.mxu0 %v3030_v20  ;;  %v3048_v24 = vld [vmem:[%s3508_s19 + $0x3a0] ss:$16 sps:$4 sm:$0xff]  }
 0x19b   : > { %2067 = vst [vmem:[#allocation2 + $0x1b0] sm:$0xff] %v2003_v25  ;;  %v1756_v29 = vadd.f32 %v1755_v28, %v1466_v26  ;;  %v1468_v30 = vpop.f32.mrf.mxu0  ;;  %1953 = vmatprep.mubr.bf16.mxu1 %v3032_v23  ;;  %v409_v25 = vld [vmem:[#allocation2 + $0x110] sm:$0xff] }
 0x19c   : > { %v1757_v31 = vpop.f32.mrf.mxu1  ;;  %v3056_v28 = vld [vmem:[%s3508_s19 + $0x3c4] ss:$16 sps:$4 sm:$0xff]  }
 0x19d   : > { %v2004_v32 = vadd.f32 %v1756_v29, %v402_v27  ;;  %v1469_v33 = vpop.f32.mrf.mxu0  ;;  %v3051_v27 = vld [vmem:[%s3508_s19 + $0x3a8] ss:$16 sps:$4 sm:$0xff]   ;;  %v3059_v31 = vld [vmem:[%s3508_s19 + $0x3cc] ss:$16 sps:$4 sm:$0xff]  }
 0x19e   : > { %v1758_v36 = vpop.f32.mrf.mxu1 }
 0x19f   : > { %2068 = vst [vmem:[#allocation2 + $0xd8] sm:$0xff] %v2004_v32  ;;  %v1759_v39 = vadd.f32 %v1758_v36, %v1469_v33  ;;  %v1471_v40 = vpop.f32.mrf.mxu0 }
 0x1a0   : > { %v1760_v42 = vpop.f32.mrf.mxu1 }
 0x1a1   : > { %v2005_v43 = vadd.f32 %v1759_v39, %v403_v35  ;;  %v1474_v44 = vpop.f32.mrf.mxu0  ;;  %1665 = vmatmul.mubr.bf16.gmra.mxu0 %v3034_v34  ;;  %v410_v35 = vld [vmem:[#allocation2 + $0x118] sm:$0xff]  ;;  %v3054_v42 = vld [vmem:[%s3508_s19 + $0x3c0] ss:$16 sps:$4 sm:$0xff]  }
 0x1a2   : > { %v1763_v46 = vpop.f32.mrf.mxu1  ;;  %1954 = vmatmul.mubr.bf16.gmra.mxu1 %v3035_v37  ;;  %1672 = vmatprep.mubr.bf16.mxu0 %v3036_v38 }
 0x1a3   : > { %2069 = vst [vmem:[#allocation2 + $0x18] sm:$0xff] %v2005_v43  ;;  %v1764_v47 = vadd.f32 %v1763_v46, %v1474_v44  ;;  %v1476_v48 = vpop.f32.mrf.mxu0  ;;  %1961 = vmatprep.mubr.bf16.mxu1 %v3038_v41  ;;  %v411_v43 = vld [vmem:[#allocation2 + $0x98] sm:$0xff]  ;;  %v3062_v46 = vld [vmem:[%s3508_s19 + $0x3e4] ss:$16 sps:$4 sm:$0xff]  }
 0x1a4   : > { %v1765_v49 = vpop.f32.mrf.mxu1 }
 0x1a5   : > { %v2006_v50 = vadd.f32 %v1764_v47, %v404_v45  ;;  %v1477_v51 = vpop.f32.mrf.mxu0  ;;  %v3057_v45 = vld [vmem:[%s3508_s19 + $0x3c8] ss:$16 sps:$4 sm:$0xff]   ;;  %v3065_v49 = vld [vmem:[%s3508_s19 + $0x3ec] ss:$16 sps:$4 sm:$0xff]  }
 0x1a6   : > { %v1766_v54 = vpop.f32.mrf.mxu1 }
 0x1a7   : > { %2070 = vst [vmem:[#allocation2 + $0x50] sm:$0xff] %v2006_v50  ;;  %v1767_v57 = vadd.f32 %v1766_v54, %v1477_v51  ;;  %v1479_v58 = vpop.f32.mrf.mxu0 }
 0x1a8   : > { %v1768_v60 = vpop.f32.mrf.mxu1 }
 0x1a9   : > { %v2007_v61 = vadd.f32 %v1767_v57, %v405_v53  ;;  %v1482_v62 = vpop.f32.mrf.mxu0  ;;  %1673 = vmatmul.mubr.bf16.gmra.mxu0 %v3040_v52  ;;  %v412_v53 = vld [vmem:[#allocation2 + $0x120] sm:$0xff] }
 0x1aa   : > { %v1771_v0 = vpop.f32.mrf.mxu1  ;;  %1962 = vmatmul.mubr.bf16.gmra.mxu1 %v3041_v55  ;;  %1680 = vmatprep.mubr.bf16.mxu0 %v3044_v56  ;;  %v3060_v60 = vld [vmem:[%s3508_s19 + $0x3e0] ss:$16 sps:$4 sm:$0xff]  }
 0x1ab   : > { %2071 = vst [vmem:[#allocation2 + $0x168] sm:$0xff] %v2007_v61  ;;  %v1772_v1 = vadd.f32 %v1771_v0, %v1482_v62  ;;  %v1484_v2 = vpop.f32.mrf.mxu0  ;;  %1969 = vmatprep.mubr.bf16.mxu1 %v3047_v59  ;;  %v413_v61 = vld [vmem:[#allocation2 + $0x150] sm:$0xff] }
 0x1ac   : > { %v1773_v3 = vpop.f32.mrf.mxu1 }
 0x1ad   : > { %v2008_v4 = vadd.f32 %v1772_v1, %v406_v63  ;;  %v1485_v5 = vpop.f32.mrf.mxu0  ;;  %v3063_v63 = vld [vmem:[%s3508_s19 + $0x3e8] ss:$16 sps:$4 sm:$0xff]  }
 0x1ae   : > { %v1774_v8 = vpop.f32.mrf.mxu1 }
 0x1af   : > { %2072 = vst [vmem:[#allocation2 + $0x130] sm:$0xff] %v2008_v4  ;;  %v1775_v11 = vadd.f32 %v1774_v8, %v1485_v5  ;;  %v1487_v12 = vpop.f32.mrf.mxu0  ;;  %v414_v5 = vld [vmem:[#allocation2 + $0x108] sm:$0xff] }
 0x1b0   : > { %v1776_v14 = vpop.f32.mrf.mxu1  ;;  %v415_v12 = vld [vmem:[#allocation2 + $0x60] sm:$0xff] }
 0x1b1   : > { %v2009_v15 = vadd.f32 %v1775_v11, %v407_v7  ;;  %v1490_v16 = vpop.f32.mrf.mxu0  ;;  %1681 = vmatmul.mubr.bf16.gmra.mxu0 %v3042_v6 }
 0x1b2   : > { %v1779_v18 = vpop.f32.mrf.mxu1  ;;  %1970 = vmatmul.mubr.bf16.gmra.mxu1 %v3045_v9  ;;  %1688 = vmatprep.mubr.bf16.mxu0 %v3050_v10 }
 0x1b3   : > { %2073 = vst [vmem:[#allocation2 + $0x48] sm:$0xff] %v2009_v15  ;;  %v1780_v19 = vadd.f32 %v1779_v18, %v1490_v16  ;;  %v1492_v20 = vpop.f32.mrf.mxu0  ;;  %1977 = vmatprep.mubr.bf16.mxu1 %v3053_v13 }
 0x1b4   : > { %v1781_v21 = vpop.f32.mrf.mxu1 }
 0x1b5   : > { %v2010_v22 = vadd.f32 %v1780_v19, %v408_v17  ;;  %v1493_v23 = vpop.f32.mrf.mxu0  ;;  %v416_v19 = vld [vmem:[#allocation2 + $0xe0] sm:$0xff] }
 0x1b6   : > { %v1782_v26 = vpop.f32.mrf.mxu1 }
 0x1b7   : > { %2074 = vst [vmem:[#allocation2 + $0x180] sm:$0xff] %v2010_v22  ;;  %v1783_v29 = vadd.f32 %v1782_v26, %v1493_v23  ;;  %v1495_v30 = vpop.f32.mrf.mxu0  ;;  %v417_v26 = vld [vmem:[#allocation2 + $0x188] sm:$0xff] }
 0x1b8   : > { %v1784_v32 = vpop.f32.mrf.mxu1 }
 0x1b9   : > { %v2011_v33 = vadd.f32 %v1783_v29, %v409_v25  ;;  %v1498_v34 = vpop.f32.mrf.mxu0  ;;  %1689 = vmatmul.mubr.bf16.gmra.mxu0 %v3048_v24 }
 0x1ba   : > { %v1787_v36 = vpop.f32.mrf.mxu1  ;;  %1978 = vmatmul.mubr.bf16.gmra.mxu1 %v3051_v27  ;;  %1696 = vmatprep.mubr.bf16.mxu0 %v3056_v28 }
 0x1bb   : > { %2075 = vst [vmem:[#allocation2 + $0x110] sm:$0xff] %v2011_v33  ;;  %v1788_v37 = vadd.f32 %v1787_v36, %v1498_v34  ;;  %v1500_v38 = vpop.f32.mrf.mxu0  ;;  %1985 = vmatprep.mubr.bf16.mxu1 %v3059_v31  ;;  %v418_v33 = vld [vmem:[#allocation2 + $0x138] sm:$0xff] }
 0x1bc   : > { %v1789_v39 = vpop.f32.mrf.mxu1 }
 0x1bd   : > { %v2012_v40 = vadd.f32 %v1788_v37, %v410_v35  ;;  %v1501_v41 = vpop.f32.mrf.mxu0 }
 0x1be   : > { %v1790_v44 = vpop.f32.mrf.mxu1 }
 0x1bf   : > { %2076 = vst [vmem:[#allocation2 + $0x118] sm:$0xff] %v2012_v40  ;;  %v1791_v47 = vadd.f32 %v1790_v44, %v1501_v41  ;;  %v1503_v48 = vpop.f32.mrf.mxu0  ;;  %v419_v40 = vld [vmem:[#allocation2 + $0x140] sm:$0xff] }
 0x1c0   : > { %v1792_v50 = vpop.f32.mrf.mxu1 }
 0x1c1   : > { %v2013_v51 = vadd.f32 %v1791_v47, %v411_v43  ;;  %v1506_v52 = vpop.f32.mrf.mxu0  ;;  %1697 = vmatmul.mubr.bf16.gmra.mxu0 %v3054_v42  ;;  %v420_v47 = vld [vmem:[#allocation2 + $0x80] sm:$0xff] }
 0x1c2   : > { %v1795_v54 = vpop.f32.mrf.mxu1  ;;  %1986 = vmatmul.mubr.bf16.gmra.mxu1 %v3057_v45  ;;  %1704 = vmatprep.mubr.bf16.mxu0 %v3062_v46 }
 0x1c3   : > { %2077 = vst [vmem:[#allocation2 + $0x98] sm:$0xff] %v2013_v51  ;;  %v1796_v55 = vadd.f32 %v1795_v54, %v1506_v52  ;;  %v1508_v56 = vpop.f32.mrf.mxu0  ;;  %1993 = vmatprep.mubr.bf16.mxu1 %v3065_v49  ;;  %v421_v54 = vld [vmem:[#allocation2 + $0x1a8] sm:$0xff] }
 0x1c4   : > { %v1797_v57 = vpop.f32.mrf.mxu1 }
 0x1c5   : > { %v2014_v58 = vadd.f32 %v1796_v55, %v412_v53  ;;  %v1509_v59 = vpop.f32.mrf.mxu0 }
 0x1c6   : > { %v1798_v62 = vpop.f32.mrf.mxu1 }
 0x1c7   : > { %2078 = vst [vmem:[#allocation2 + $0x120] sm:$0xff] %v2014_v58  ;;  %v1799_v0 = vadd.f32 %v1798_v62, %v1509_v59  ;;  %v1511_v1 = vpop.f32.mrf.mxu0 }
 0x1c8   : > { %v1800_v2 = vpop.f32.mrf.mxu1 }
 0x1c9   : > { %v2015_v3 = vadd.f32 %v1799_v0, %v413_v61  ;;  %v1514_v4 = vpop.f32.mrf.mxu0  ;;  %1705 = vmatmul.mubr.bf16.gmra.mxu0 %v3060_v60  ;;  %v422_v61 = vld [vmem:[#allocation2 + $0x1b8] sm:$0xff] }
 0x1ca   : > { %v1803_v6 = vpop.f32.mrf.mxu1  ;;  %1994 = vmatmul.mubr.bf16.gmra.mxu1 %v3063_v63 }
 0x1cb   : > { %2079 = vst [vmem:[#allocation2 + $0x150] sm:$0xff] %v2015_v3  ;;  %v1804_v7 = vadd.f32 %v1803_v6, %v1514_v4  ;;  %v1516_v8 = vpop.f32.mrf.mxu0  ;;  %v423_v4 = vld [vmem:[#allocation2 + $0x28] sm:$0xff] }
 0x1cc   : > { %v1805_v9 = vpop.f32.mrf.mxu1 }
 0x1cd   : > { %v2016_v10 = vadd.f32 %v1804_v7, %v414_v5  ;;  %v1517_v11 = vpop.f32.mrf.mxu0 }
 0x1ce   : > { %v1806_v13 = vpop.f32.mrf.mxu1 }
 0x1cf   : > { %2080 = vst [vmem:[#allocation2 + $0x108] sm:$0xff] %v2016_v10  ;;  %v1807_v14 = vadd.f32 %v1806_v13, %v1517_v11  ;;  %v1519_v15 = vpop.f32.mrf.mxu0  ;;  %v424_v11 = vld [vmem:[#allocation2 + $0x1e8] sm:$0xff] }
 0x1d0   : > { %v1808_v16 = vpop.f32.mrf.mxu1 }
 0x1d1   : > { %v2017_v17 = vadd.f32 %v1807_v14, %v415_v12  ;;  %v1522_v18 = vpop.f32.mrf.mxu0 }
 0x1d2   : > { %v1811_v20 = vpop.f32.mrf.mxu1 }
 0x1d3   : > { %2081 = vst [vmem:[#allocation2 + $0x60] sm:$0xff] %v2017_v17  ;;  %v1812_v21 = vadd.f32 %v1811_v20, %v1522_v18  ;;  %v1524_v22 = vpop.f32.mrf.mxu0  ;;  %v425_v18 = vld [vmem:[#allocation2 + $0xf8] sm:$0xff] }
 0x1d4   : > { %v1813_v23 = vpop.f32.mrf.mxu1 }
 0x1d5   : > { %v2018_v24 = vadd.f32 %v1812_v21, %v416_v19  ;;  %v1525_v25 = vpop.f32.mrf.mxu0 }
 0x1d6   : > { %v1814_v27 = vpop.f32.mrf.mxu1 }
 0x1d7   : > { %2082 = vst [vmem:[#allocation2 + $0xe0] sm:$0xff] %v2018_v24  ;;  %v1815_v28 = vadd.f32 %v1814_v27, %v1525_v25  ;;  %v1527_v29 = vpop.f32.mrf.mxu0  ;;  %v426_v25 = vld [vmem:[#allocation2 + $0x160] sm:$0xff] }
 0x1d8   : > { %v1816_v30 = vpop.f32.mrf.mxu1 }
 0x1d9   : > { %v2019_v31 = vadd.f32 %v1815_v28, %v417_v26  ;;  %v1530_v32 = vpop.f32.mrf.mxu0 }
 0x1da   : > { %v1819_v34 = vpop.f32.mrf.mxu1 }
 0x1db   : > { %2083 = vst [vmem:[#allocation2 + $0x188] sm:$0xff] %v2019_v31  ;;  %v1820_v35 = vadd.f32 %v1819_v34, %v1530_v32  ;;  %v1532_v36 = vpop.f32.mrf.mxu0  ;;  %v427_v32 = vld [vmem:[#allocation2 + $0x30] sm:$0xff] }
 0x1dc   : > { %v1821_v37 = vpop.f32.mrf.mxu1 }
 0x1dd   : > { %v2020_v38 = vadd.f32 %v1820_v35, %v418_v33  ;;  %v1533_v39 = vpop.f32.mrf.mxu0 }
 0x1de   : > { %v1822_v41 = vpop.f32.mrf.mxu1 }
 0x1df   : > { %2084 = vst [vmem:[#allocation2 + $0x138] sm:$0xff] %v2020_v38  ;;  %v1823_v42 = vadd.f32 %v1822_v41, %v1533_v39  ;;  %v1535_v43 = vpop.f32.mrf.mxu0  ;;  %v428_v39 = vld [vmem:[#allocation2 + $0x1e0] sm:$0xff] }
 0x1e0   : > { %v1824_v44 = vpop.f32.mrf.mxu1 }
 0x1e1   : > { %v2021_v45 = vadd.f32 %v1823_v42, %v419_v40  ;;  %v1538_v46 = vpop.f32.mrf.mxu0 }
 0x1e2   : > { %v1827_v48 = vpop.f32.mrf.mxu1 }
 0x1e3   : > { %2085 = vst [vmem:[#allocation2 + $0x140] sm:$0xff] %v2021_v45  ;;  %v1828_v49 = vadd.f32 %v1827_v48, %v1538_v46  ;;  %v1540_v50 = vpop.f32.mrf.mxu0  ;;  %v429_v46 = vld [vmem:[#allocation2] sm:$0xff] }
 0x1e4   : > { %v1829_v51 = vpop.f32.mrf.mxu1 }
 0x1e5   : > { %v2022_v52 = vadd.f32 %v1828_v49, %v420_v47  ;;  %v1541_v53 = vpop.f32.mrf.mxu0 }
 0x1e6   : > { %v1830_v55 = vpop.f32.mrf.mxu1 }
 0x1e7   : > { %2086 = vst [vmem:[#allocation2 + $0x80] sm:$0xff] %v2022_v52  ;;  %v1831_v56 = vadd.f32 %v1830_v55, %v1541_v53  ;;  %v1543_v57 = vpop.f32.mrf.mxu0  ;;  %v430_v53 = vld [vmem:[#allocation2 + $0xf0] sm:$0xff] }
 0x1e8   : > { %v1832_v58 = vpop.f32.mrf.mxu1 }
 0x1e9   : > { %v2023_v59 = vadd.f32 %v1831_v56, %v421_v54  ;;  %v1546_v60 = vpop.f32.mrf.mxu0 }
 0x1ea   : > { %v1835_v62 = vpop.f32.mrf.mxu1 }
 0x1eb   : > { %2087 = vst [vmem:[#allocation2 + $0x1a8] sm:$0xff] %v2023_v59  ;;  %v1836_v63 = vadd.f32 %v1835_v62, %v1546_v60  ;;  %v1548_v0 = vpop.f32.mrf.mxu0  ;;  %v431_v60 = vld [vmem:[#allocation2 + $0x8] sm:$0xff] }
 0x1ec   : > { %v1837_v1 = vpop.f32.mrf.mxu1 }
 0x1ed   : > { %v2024_v2 = vadd.f32 %v1836_v63, %v422_v61  ;;  %v1549_v3 = vpop.f32.mrf.mxu0 }
 0x1ee   : > { %v1838_v5 = vpop.f32.mrf.mxu1 }
 0x1ef   : > { %2088 = vst [vmem:[#allocation2 + $0x1b8] sm:$0xff] %v2024_v2  ;;  %v1839_v6 = vadd.f32 %v1838_v5, %v1549_v3  ;;  %v1551_v7 = vpop.f32.mrf.mxu0  ;;  %v432_v3 = vld [vmem:[#allocation2 + $0x148] sm:$0xff] }
 0x1f0   : > { %v1840_v8 = vpop.f32.mrf.mxu1 }
 0x1f1   : > { %v2025_v9 = vadd.f32 %v1839_v6, %v423_v4  ;;  %v1554_v10 = vpop.f32.mrf.mxu0 }
 0x1f2   : > { %v1843_v12 = vpop.f32.mrf.mxu1 }
 0x1f3   : > { %2089 = vst [vmem:[#allocation2 + $0x28] sm:$0xff] %v2025_v9  ;;  %v1844_v13 = vadd.f32 %v1843_v12, %v1554_v10  ;;  %v1556_v14 = vpop.f32.mrf.mxu0  ;;  %v433_v10 = vld [vmem:[#allocation2 + $0x1d0] sm:$0xff] }
 0x1f4   : > { %v1845_v15 = vpop.f32.mrf.mxu1 }
 0x1f5   : > { %v2026_v16 = vadd.f32 %v1844_v13, %v424_v11  ;;  %v1557_v17 = vpop.f32.mrf.mxu0 }
 0x1f6   : > { %v1846_v19 = vpop.f32.mrf.mxu1 }
 0x1f7   : > { %2090 = vst [vmem:[#allocation2 + $0x1e8] sm:$0xff] %v2026_v16  ;;  %v1847_v20 = vadd.f32 %v1846_v19, %v1557_v17  ;;  %v1559_v21 = vpop.f32.mrf.mxu0  ;;  %v434_v17 = vld [vmem:[#allocation2 + $0x100] sm:$0xff] }
 0x1f8   : > { %v1848_v22 = vpop.f32.mrf.mxu1 }
 0x1f9   : > { %v2027_v23 = vadd.f32 %v1847_v20, %v425_v18  ;;  %v1562_v24 = vpop.f32.mrf.mxu0 }
 0x1fa   : > { %v1851_v26 = vpop.f32.mrf.mxu1 }
 0x1fb   : > { %2091 = vst [vmem:[#allocation2 + $0xf8] sm:$0xff] %v2027_v23  ;;  %v1852_v27 = vadd.f32 %v1851_v26, %v1562_v24  ;;  %v1564_v28 = vpop.f32.mrf.mxu0  ;;  %v435_v24 = vld [vmem:[#allocation2 + $0xc8] sm:$0xff] }
 0x1fc   : > { %v1853_v29 = vpop.f32.mrf.mxu1 }
 0x1fd   : > { %v2028_v30 = vadd.f32 %v1852_v27, %v426_v25  ;;  %v1565_v31 = vpop.f32.mrf.mxu0 }
 0x1fe   : > { %v1854_v33 = vpop.f32.mrf.mxu1 }
 0x1ff   : > { %2092 = vst [vmem:[#allocation2 + $0x160] sm:$0xff] %v2028_v30  ;;  %v1855_v34 = vadd.f32 %v1854_v33, %v1565_v31  ;;  %v1567_v35 = vpop.f32.mrf.mxu0  ;;  %v436_v31 = vld [vmem:[#allocation2 + $0x40] sm:$0xff] }
 0x200   : > { %v1856_v36 = vpop.f32.mrf.mxu1 }
 0x201   : > { %v2029_v37 = vadd.f32 %v1855_v34, %v427_v32  ;;  %v1570_v38 = vpop.f32.mrf.mxu0 }
 0x202   : > { %v1859_v40 = vpop.f32.mrf.mxu1 }
 0x203   : > { %2093 = vst [vmem:[#allocation2 + $0x30] sm:$0xff] %v2029_v37  ;;  %v1860_v41 = vadd.f32 %v1859_v40, %v1570_v38  ;;  %v1572_v42 = vpop.f32.mrf.mxu0  ;;  %v437_v38 = vld [vmem:[#allocation2 + $0x1f8] sm:$0xff] }
 0x204   : > { %v1861_v43 = vpop.f32.mrf.mxu1 }
 0x205   : > { %v2030_v44 = vadd.f32 %v1860_v41, %v428_v39  ;;  %v1573_v45 = vpop.f32.mrf.mxu0 }
 0x206   : > { %v1862_v47 = vpop.f32.mrf.mxu1 }
 0x207   : > { %2094 = vst [vmem:[#allocation2 + $0x1e0] sm:$0xff] %v2030_v44  ;;  %v1863_v48 = vadd.f32 %v1862_v47, %v1573_v45  ;;  %v1575_v49 = vpop.f32.mrf.mxu0  ;;  %v438_v45 = vld [vmem:[#allocation2 + $0x20] sm:$0xff] }
 0x208   : > { %v1864_v50 = vpop.f32.mrf.mxu1 }
 0x209   : > { %v2031_v51 = vadd.f32 %v1863_v48, %v429_v46  ;;  %v1578_v52 = vpop.f32.mrf.mxu0 }
 0x20a   : > { %v1867_v54 = vpop.f32.mrf.mxu1 }
 0x20b   : > { %2095 = vst [vmem:[#allocation2] sm:$0xff] %v2031_v51  ;;  %v1868_v55 = vadd.f32 %v1867_v54, %v1578_v52  ;;  %v1580_v56 = vpop.f32.mrf.mxu0  ;;  %v439_v52 = vld [vmem:[#allocation2 + $0x128] sm:$0xff] }
 0x20c   : > { %v1869_v57 = vpop.f32.mrf.mxu1 }
 0x20d   : > { %v2032_v58 = vadd.f32 %v1868_v55, %v430_v53  ;;  %v1581_v59 = vpop.f32.mrf.mxu0 }
 0x20e   : > { %v1870_v61 = vpop.f32.mrf.mxu1 }
 0x20f   : > { %2096 = vst [vmem:[#allocation2 + $0xf0] sm:$0xff] %v2032_v58  ;;  %v1871_v62 = vadd.f32 %v1870_v61, %v1581_v59  ;;  %v1583_v63 = vpop.f32.mrf.mxu0  ;;  %v440_v59 = vld [vmem:[#allocation2 + $0x1a0] sm:$0xff] }
 0x210   : > { %v1872_v0 = vpop.f32.mrf.mxu1 }
 0x211   : > { %v2033_v1 = vadd.f32 %v1871_v62, %v431_v60  ;;  %v1586_v2 = vpop.f32.mrf.mxu0 }
 0x212   : > { %v1875_v4 = vpop.f32.mrf.mxu1 }
 0x213   : > { %2097 = vst [vmem:[#allocation2 + $0x8] sm:$0xff] %v2033_v1  ;;  %v1876_v5 = vadd.f32 %v1875_v4, %v1586_v2  ;;  %v1588_v6 = vpop.f32.mrf.mxu0  ;;  %v441_v2 = vld [vmem:[#allocation2 + $0x1f0] sm:$0xff] }
 0x214   : > { %v1877_v7 = vpop.f32.mrf.mxu1 }
 0x215   : > { %v2034_v8 = vadd.f32 %v1876_v5, %v432_v3  ;;  %v1589_v9 = vpop.f32.mrf.mxu0 }
 0x216   : > { %v1878_v11 = vpop.f32.mrf.mxu1 }
 0x217   : > { %2098 = vst [vmem:[#allocation2 + $0x148] sm:$0xff] %v2034_v8  ;;  %v1879_v12 = vadd.f32 %v1878_v11, %v1589_v9  ;;  %v1591_v13 = vpop.f32.mrf.mxu0  ;;  %v442_v9 = vld [vmem:[#allocation2 + $0xe8] sm:$0xff] }
 0x218   : > { %v1880_v14 = vpop.f32.mrf.mxu1 }
 0x219   : > { %v2035_v15 = vadd.f32 %v1879_v12, %v433_v10  ;;  %v1594_v16 = vpop.f32.mrf.mxu0 }
 0x21a   : > { %v1883_v18 = vpop.f32.mrf.mxu1 }
 0x21b   : > { %2099 = vst [vmem:[#allocation2 + $0x1d0] sm:$0xff] %v2035_v15  ;;  %v1884_v19 = vadd.f32 %v1883_v18, %v1594_v16  ;;  %v1596_v20 = vpop.f32.mrf.mxu0  ;;  %v443_v16 = vld [vmem:[#allocation2 + $0x78] sm:$0xff] }
 0x21c   : > { %v1885_v21 = vpop.f32.mrf.mxu1 }
 0x21d   : > { %v2036_v22 = vadd.f32 %v1884_v19, %v434_v17  ;;  %v1597_v23 = vpop.f32.mrf.mxu0 }
 0x21e   : > { %v1886_v25 = vpop.f32.mrf.mxu1 }
 0x21f   : > { %2100 = vst [vmem:[#allocation2 + $0x100] sm:$0xff] %v2036_v22  ;;  %v1887_v26 = vadd.f32 %v1886_v25, %v1597_v23  ;;  %v1599_v27 = vpop.f32.mrf.mxu0  ;;  %v444_v23 = vld [vmem:[#allocation2 + $0x70] sm:$0xff] }
 0x220   : > { %v1888_v28 = vpop.f32.mrf.mxu1 }
 0x221   : > { %v2037_v29 = vadd.f32 %v1887_v26, %v435_v24  ;;  %v1602_v30 = vpop.f32.mrf.mxu0 }
 0x222   : > { %v1891_v32 = vpop.f32.mrf.mxu1 }
 0x223   : > { %2101 = vst [vmem:[#allocation2 + $0xc8] sm:$0xff] %v2037_v29  ;;  %v1892_v33 = vadd.f32 %v1891_v32, %v1602_v30  ;;  %v1604_v34 = vpop.f32.mrf.mxu0  ;;  %v445_v30 = vld [vmem:[#allocation2 + $0x90] sm:$0xff] }
 0x224   : > { %v1893_v35 = vpop.f32.mrf.mxu1 }
 0x225   : > { %v2038_v36 = vadd.f32 %v1892_v33, %v436_v31  ;;  %v1605_v37 = vpop.f32.mrf.mxu0 }
 0x226   : > { %v1894_v39 = vpop.f32.mrf.mxu1 }
 0x227   : > { %2102 = vst [vmem:[#allocation2 + $0x40] sm:$0xff] %v2038_v36  ;;  %v1895_v40 = vadd.f32 %v1894_v39, %v1605_v37  ;;  %v1607_v41 = vpop.f32.mrf.mxu0  ;;  %v446_v37 = vld [vmem:[#allocation2 + $0x1d8] sm:$0xff] }
 0x228   : > { %v1896_v42 = vpop.f32.mrf.mxu1 }
 0x229   : > { %v2039_v43 = vadd.f32 %v1895_v40, %v437_v38  ;;  %v1610_v44 = vpop.f32.mrf.mxu0 }
 0x22a   : > { %v1899_v46 = vpop.f32.mrf.mxu1 }
 0x22b   : > { %2103 = vst [vmem:[#allocation2 + $0x1f8] sm:$0xff] %v2039_v43  ;;  %v1900_v47 = vadd.f32 %v1899_v46, %v1610_v44  ;;  %v1612_v48 = vpop.f32.mrf.mxu0  ;;  %v447_v44 = vld [vmem:[#allocation2 + $0xd0] sm:$0xff] }
 0x22c   : > { %v1901_v49 = vpop.f32.mrf.mxu1 }
 0x22d   : > { %v2040_v50 = vadd.f32 %v1900_v47, %v438_v45  ;;  %v1613_v51 = vpop.f32.mrf.mxu0 }
 0x22e   : > { %v1902_v53 = vpop.f32.mrf.mxu1 }
 0x22f   : > { %2104 = vst [vmem:[#allocation2 + $0x20] sm:$0xff] %v2040_v50  ;;  %v1903_v54 = vadd.f32 %v1902_v53, %v1613_v51  ;;  %v1615_v55 = vpop.f32.mrf.mxu0  ;;  %v448_v51 = vld [vmem:[#allocation2 + $0xb8] sm:$0xff] }
 0x230   : > { %v1904_v56 = vpop.f32.mrf.mxu1 }
 0x231   : > { %v2041_v57 = vadd.f32 %v1903_v54, %v439_v52  ;;  %v1618_v58 = vpop.f32.mrf.mxu0 }
 0x232   : > { %v1907_v60 = vpop.f32.mrf.mxu1 }
 0x233   : > { %2105 = vst [vmem:[#allocation2 + $0x128] sm:$0xff] %v2041_v57  ;;  %v1908_v61 = vadd.f32 %v1907_v60, %v1618_v58  ;;  %v1620_v62 = vpop.f32.mrf.mxu0  ;;  %v449_v58 = vld [vmem:[#allocation2 + $0x88] sm:$0xff] }
 0x234   : > { %v1909_v63 = vpop.f32.mrf.mxu1 }
 0x235   : > { %v2042_v0 = vadd.f32 %v1908_v61, %v440_v59  ;;  %v1621_v1 = vpop.f32.mrf.mxu0 }
 0x236   : > { %v1910_v3 = vpop.f32.mrf.mxu1 }
 0x237   : > { %2106 = vst [vmem:[#allocation2 + $0x1a0] sm:$0xff] %v2042_v0  ;;  %v1911_v4 = vadd.f32 %v1910_v3, %v1621_v1  ;;  %v1623_v5 = vpop.f32.mrf.mxu0  ;;  %v450_v1 = vld [vmem:[#allocation2 + $0xa8] sm:$0xff] }
 0x238   : > { %v1912_v6 = vpop.f32.mrf.mxu1 }
 0x239   : > { %v2043_v7 = vadd.f32 %v1911_v4, %v441_v2  ;;  %v1626_v8 = vpop.f32.mrf.mxu0 }
 0x23a   : > { %v1915_v10 = vpop.f32.mrf.mxu1 }
 0x23b   : > { %2107 = vst [vmem:[#allocation2 + $0x1f0] sm:$0xff] %v2043_v7  ;;  %v1916_v11 = vadd.f32 %v1915_v10, %v1626_v8  ;;  %v1628_v12 = vpop.f32.mrf.mxu0  ;;  %v451_v8 = vld [vmem:[#allocation2 + $0x1c8] sm:$0xff] }
 0x23c   : > { %v1917_v13 = vpop.f32.mrf.mxu1 }
 0x23d   : > { %v2044_v14 = vadd.f32 %v1916_v11, %v442_v9  ;;  %v1629_v15 = vpop.f32.mrf.mxu0 }
 0x23e   : > { %v1918_v17 = vpop.f32.mrf.mxu1 }
 0x23f   : > { %2108 = vst [vmem:[#allocation2 + $0xe8] sm:$0xff] %v2044_v14  ;;  %v1919_v18 = vadd.f32 %v1918_v17, %v1629_v15  ;;  %v1631_v19 = vpop.f32.mrf.mxu0  ;;  %v452_v15 = vld [vmem:[#allocation2 + $0x170] sm:$0xff] }
 0x240   : > { %v1920_v20 = vpop.f32.mrf.mxu1 }
 0x241   : > { %v2045_v21 = vadd.f32 %v1919_v18, %v443_v16  ;;  %v1634_v22 = vpop.f32.mrf.mxu0 }
 0x242   : > { %v1923_v24 = vpop.f32.mrf.mxu1 }
 0x243   : > { %2109 = vst [vmem:[#allocation2 + $0x78] sm:$0xff] %v2045_v21  ;;  %v1924_v25 = vadd.f32 %v1923_v24, %v1634_v22  ;;  %v1636_v26 = vpop.f32.mrf.mxu0  ;;  %v453_v22 = vld [vmem:[#allocation2 + $0x178] sm:$0xff] }
 0x244   : > { %v1925_v27 = vpop.f32.mrf.mxu1 }
 0x245   : > { %v2046_v28 = vadd.f32 %v1924_v25, %v444_v23  ;;  %v1637_v29 = vpop.f32.mrf.mxu0 }
 0x246   : > { %v1926_v31 = vpop.f32.mrf.mxu1 }
 0x247   : > { %2110 = vst [vmem:[#allocation2 + $0x70] sm:$0xff] %v2046_v28  ;;  %v1927_v32 = vadd.f32 %v1926_v31, %v1637_v29  ;;  %v1639_v33 = vpop.f32.mrf.mxu0  ;;  %v454_v29 = vld [vmem:[#allocation2 + $0x68] sm:$0xff] }
 0x248   : > { %v1928_v34 = vpop.f32.mrf.mxu1 }
 0x249   : > { %v2047_v35 = vadd.f32 %v1927_v32, %v445_v30  ;;  %v1642_v36 = vpop.f32.mrf.mxu0 }
 0x24a   : > { %v1931_v38 = vpop.f32.mrf.mxu1 }
 0x24b   : > { %2111 = vst [vmem:[#allocation2 + $0x90] sm:$0xff] %v2047_v35  ;;  %v1932_v39 = vadd.f32 %v1931_v38, %v1642_v36  ;;  %v1644_v40 = vpop.f32.mrf.mxu0  ;;  %v455_v36 = vld [vmem:[#allocation2 + $0x190] sm:$0xff] }
 0x24c   : > { %v1933_v41 = vpop.f32.mrf.mxu1 }
 0x24d   : > { %v2048_v42 = vadd.f32 %v1932_v39, %v446_v37  ;;  %v1645_v43 = vpop.f32.mrf.mxu0 }
 0x24e   : > { %v1934_v45 = vpop.f32.mrf.mxu1 }
 0x24f   : > { %2112 = vst [vmem:[#allocation2 + $0x1d8] sm:$0xff] %v2048_v42  ;;  %v1935_v46 = vadd.f32 %v1934_v45, %v1645_v43  ;;  %v1647_v47 = vpop.f32.mrf.mxu0  ;;  %v456_v43 = vld [vmem:[#allocation2 + $0x198] sm:$0xff] }
 0x250   : > { %v1936_v48 = vpop.f32.mrf.mxu1 }
 0x251   : > { %v2049_v49 = vadd.f32 %v1935_v46, %v447_v44  ;;  %v1650_v50 = vpop.f32.mrf.mxu0 }
 0x252   : > { %v1939_v52 = vpop.f32.mrf.mxu1 }
 0x253   : > { %2113 = vst [vmem:[#allocation2 + $0xd0] sm:$0xff] %v2049_v49  ;;  %v1940_v53 = vadd.f32 %v1939_v52, %v1650_v50  ;;  %v1652_v54 = vpop.f32.mrf.mxu0  ;;  %v457_v50 = vld [vmem:[#allocation2 + $0x38] sm:$0xff] }
 0x254   : > { %v1941_v55 = vpop.f32.mrf.mxu1 }
 0x255   : > { %v2050_v56 = vadd.f32 %v1940_v53, %v448_v51  ;;  %v1653_v57 = vpop.f32.mrf.mxu0 }
 0x256   : > { %v1942_v59 = vpop.f32.mrf.mxu1 }
 0x257   : > { %2114 = vst [vmem:[#allocation2 + $0xb8] sm:$0xff] %v2050_v56  ;;  %v1943_v60 = vadd.f32 %v1942_v59, %v1653_v57  ;;  %v1655_v61 = vpop.f32.mrf.mxu0  ;;  %v458_v57 = vld [vmem:[#allocation2 + $0xc0] sm:$0xff] }
 0x258   : > { %v1944_v62 = vpop.f32.mrf.mxu1 }
 0x259   : > { %v2051_v63 = vadd.f32 %v1943_v60, %v449_v58  ;;  %v1658_v0 = vpop.f32.mrf.mxu0 }
 0x25a   : > { %v1947_v2 = vpop.f32.mrf.mxu1 }
 0x25b   : > { %2115 = vst [vmem:[#allocation2 + $0x88] sm:$0xff] %v2051_v63  ;;  %v1948_v3 = vadd.f32 %v1947_v2, %v1658_v0  ;;  %v1660_v4 = vpop.f32.mrf.mxu0  ;;  %v459_v0 = vld [vmem:[#allocation2 + $0x1c0] sm:$0xff] }
 0x25c   : > { %v1949_v5 = vpop.f32.mrf.mxu1 }
 0x25d   : > { %v2052_v6 = vadd.f32 %v1948_v3, %v450_v1  ;;  %v1661_v7 = vpop.f32.mrf.mxu0 }
 0x25e   : > { %v1950_v9 = vpop.f32.mrf.mxu1 }
 0x25f   : > { %2116 = vst [vmem:[#allocation2 + $0xa8] sm:$0xff] %v2052_v6  ;;  %v1951_v10 = vadd.f32 %v1950_v9, %v1661_v7  ;;  %v1663_v11 = vpop.f32.mrf.mxu0  ;;  %v460_v7 = vld [vmem:[#allocation2 + $0x158] sm:$0xff] }
 0x260   : > { %v1952_v12 = vpop.f32.mrf.mxu1 }
 0x261   : > { %v2053_v13 = vadd.f32 %v1951_v10, %v451_v8  ;;  %v1666_v14 = vpop.f32.mrf.mxu0 }
 0x262   : > { %v1955_v16 = vpop.f32.mrf.mxu1 }
 0x263   : > { %2117 = vst [vmem:[#allocation2 + $0x1c8] sm:$0xff] %v2053_v13  ;;  %v1956_v17 = vadd.f32 %v1955_v16, %v1666_v14  ;;  %v1668_v18 = vpop.f32.mrf.mxu0  ;;  %v461_v14 = vld [vmem:[#allocation2 + $0x10] sm:$0xff] }
 0x264   : > { %v1957_v19 = vpop.f32.mrf.mxu1 }
 0x265   : > { %v2054_v20 = vadd.f32 %v1956_v17, %v452_v15  ;;  %v1669_v21 = vpop.f32.mrf.mxu0 }
 0x266   : > { %v1958_v23 = vpop.f32.mrf.mxu1 }
 0x267   : > { %2118 = vst [vmem:[#allocation2 + $0x170] sm:$0xff] %v2054_v20  ;;  %v1959_v24 = vadd.f32 %v1958_v23, %v1669_v21  ;;  %v1671_v25 = vpop.f32.mrf.mxu0  ;;  %v462_v21 = vld [vmem:[#allocation2 + $0x58] sm:$0xff] }
 0x268   : > { %v1960_v26 = vpop.f32.mrf.mxu1 }
 0x269   : > { %v2055_v27 = vadd.f32 %v1959_v24, %v453_v22  ;;  %v1674_v28 = vpop.f32.mrf.mxu0 }
 0x26a   : > { %v1963_v30 = vpop.f32.mrf.mxu1 }
 0x26b   : > { %2119 = vst [vmem:[#allocation2 + $0x178] sm:$0xff] %v2055_v27  ;;  %v1964_v31 = vadd.f32 %v1963_v30, %v1674_v28  ;;  %v1676_v32 = vpop.f32.mrf.mxu0  ;;  %v463_v28 = vld [vmem:[#allocation2 + $0xa0] sm:$0xff] }
 0x26c   : > { %v1965_v33 = vpop.f32.mrf.mxu1 }
 0x26d   : > { %v2056_v34 = vadd.f32 %v1964_v31, %v454_v29  ;;  %v1677_v35 = vpop.f32.mrf.mxu0 }
 0x26e   : > { %v1966_v37 = vpop.f32.mrf.mxu1 }
 0x26f   : > { %2120 = vst [vmem:[#allocation2 + $0x68] sm:$0xff] %v2056_v34  ;;  %v1967_v38 = vadd.f32 %v1966_v37, %v1677_v35  ;;  %v1679_v39 = vpop.f32.mrf.mxu0 }
 0x270   : > { %v1968_v40 = vpop.f32.mrf.mxu1 }
 0x271   : > { %v2057_v41 = vadd.f32 %v1967_v38, %v455_v36  ;;  %v1682_v42 = vpop.f32.mrf.mxu0 }
 0x272   : > { %v1971_v44 = vpop.f32.mrf.mxu1 }
 0x273   : > { %2121 = vst [vmem:[#allocation2 + $0x190] sm:$0xff] %v2057_v41  ;;  %v1972_v45 = vadd.f32 %v1971_v44, %v1682_v42  ;;  %v1684_v46 = vpop.f32.mrf.mxu0 }
 0x274   : > { %v1973_v47 = vpop.f32.mrf.mxu1 }
 0x275   : > { %v2058_v48 = vadd.f32 %v1972_v45, %v456_v43  ;;  %v1685_v49 = vpop.f32.mrf.mxu0 }
 0x276   : > { %v1974_v51 = vpop.f32.mrf.mxu1 }
 0x277   : > { %2122 = vst [vmem:[#allocation2 + $0x198] sm:$0xff] %v2058_v48  ;;  %v1975_v52 = vadd.f32 %v1974_v51, %v1685_v49  ;;  %v1687_v53 = vpop.f32.mrf.mxu0 }
 0x278   : > { %v1976_v54 = vpop.f32.mrf.mxu1 }
 0x279   : > { %v2059_v55 = vadd.f32 %v1975_v52, %v457_v50  ;;  %v1690_v56 = vpop.f32.mrf.mxu0 }
 0x27a   : > { %v1979_v58 = vpop.f32.mrf.mxu1 }
 0x27b   : > { %2123 = vst [vmem:[#allocation2 + $0x38] sm:$0xff] %v2059_v55  ;;  %v1980_v59 = vadd.f32 %v1979_v58, %v1690_v56  ;;  %v1692_v60 = vpop.f32.mrf.mxu0 }
 0x27c   : > { %v1981_v61 = vpop.f32.mrf.mxu1 }
 0x27d   : > { %v2060_v62 = vadd.f32 %v1980_v59, %v458_v57  ;;  %v1693_v63 = vpop.f32.mrf.mxu0 }
 0x27e   : > { %v1982_v1 = vpop.f32.mrf.mxu1 }
 0x27f   : > { %2124 = vst [vmem:[#allocation2 + $0xc0] sm:$0xff] %v2060_v62  ;;  %v1983_v2 = vadd.f32 %v1982_v1, %v1693_v63  ;;  %v1695_v3 = vpop.f32.mrf.mxu0 }
 0x280   : > { %v1984_v4 = vpop.f32.mrf.mxu1 }
 0x281   : > { %v2061_v5 = vadd.f32 %v1983_v2, %v459_v0  ;;  %v1698_v6 = vpop.f32.mrf.mxu0 }
 0x282   : > { %v1987_v8 = vpop.f32.mrf.mxu1 }
 0x283   : > { %2125 = vst [vmem:[#allocation2 + $0x1c0] sm:$0xff] %v2061_v5  ;;  %v1988_v9 = vadd.f32 %v1987_v8, %v1698_v6  ;;  %v1700_v10 = vpop.f32.mrf.mxu0 }
 0x284   : > { %v1989_v11 = vpop.f32.mrf.mxu1 }
 0x285   : > { %v2062_v12 = vadd.f32 %v1988_v9, %v460_v7  ;;  %v1701_v13 = vpop.f32.mrf.mxu0 }
 0x286   : > { %v1990_v15 = vpop.f32.mrf.mxu1 }
 0x287   : > { %2126 = vst [vmem:[#allocation2 + $0x158] sm:$0xff] %v2062_v12  ;;  %v1991_v16 = vadd.f32 %v1990_v15, %v1701_v13  ;;  %v1703_v17 = vpop.f32.mrf.mxu0 }
 0x288   : > { %v1992_v18 = vpop.f32.mrf.mxu1 }
 0x289   : > { %v2063_v19 = vadd.f32 %v1991_v16, %v461_v14  ;;  %v1706_v20 = vpop.f32.mrf.mxu0 }
 0x28a   : > { %v1995_v22 = vpop.f32.mrf.mxu1 }
 0x28b   : > { %2127 = vst [vmem:[#allocation2 + $0x10] sm:$0xff] %v2063_v19  ;;  %v1996_v23 = vadd.f32 %v1995_v22, %v1706_v20  ;;  %v1708_v24 = vpop.f32.mrf.mxu0 }
 0x28c   : > { %v1997_v25 = vpop.f32.mrf.mxu1 }
 0x28d   : > { %v2064_v26 = vadd.f32 %v1996_v23, %v462_v21  ;;  %v1709_v27 = vpop.f32.mrf.mxu0 }
 0x28e   : > { %v1998_v29 = vpop.f32.mrf.mxu1 }
 0x28f   : > { %2128 = vst [vmem:[#allocation2 + $0x58] sm:$0xff] %v2064_v26  ;;  %v1999_v30 = vadd.f32 %v1998_v29, %v1709_v27  ;;  %v1711_v31 = vpop.f32.mrf.mxu0  ;;  %2133 = sbr.rel (%p2704_p7) target bundleno = 712 (0x2c8), region = 52 }
 0x290   : > { %v2000_v32 = vpop.f32.mrf.mxu1 }
 0x291   : > { %v2065_v33 = vadd.f32 %v1999_v30, %v463_v28 }
 0x293   : > { %2129 = vst [vmem:[#allocation2 + $0xa0] sm:$0xff] %v2065_v33 }
 0x294   : > { %v2134_v34 = vld [vmem:[#allocation2 + $0xb0] sm:$0xff]  ;;  %v2198_v35 = vld [vmem:[%s3521_s25] sm:$0xff]  ;;  %v2199_v38 = vld [vmem:[%s3521_s25 + $0x8] sm:$0xff] }
 0x295   : > { %v2135_v36 = vld [vmem:[#allocation2 + $0x1b0] sm:$0xff]  ;;  %v2262_v37 = vadd.f32 %v2198_v35, %v2134_v34  ;;  %v2136_v39 = vld [vmem:[#allocation2 + $0xd8] sm:$0xff]  ;;  %v2202_v47 = vld [vmem:[%s3521_s25 + $0x20] sm:$0xff] }
 0x296   : > { %v2200_v40 = vld [vmem:[%s3521_s25 + $0x10] sm:$0xff]  ;;  %v2263_v41 = vadd.f32 %v2199_v38, %v2135_v36  ;;  %v2137_v43 = vld [vmem:[#allocation2 + $0x18] sm:$0xff]  ;;  %v2139_v48 = vld [vmem:[#allocation2 + $0x168] sm:$0xff] }
 0x297   : > { %v2264_v42 = vadd.f32 %v2200_v40, %v2136_v39  ;;  %v2201_v44 = vld [vmem:[%s3521_s25 + $0x18] sm:$0xff]  ;;  %v2138_v45 = vld [vmem:[#allocation2 + $0x50] sm:$0xff]  ;;  %2326 = vst [vmem:[%s3527_s24] sm:$0xff] %v2262_v37  ;;  %v2203_v49 = vld [vmem:[%s3521_s25 + $0x28] sm:$0xff] }
 0x298   : > { %v2265_v46 = vadd.f32 %v2201_v44, %v2137_v43  ;;  %2327 = vst [vmem:[%s3527_s24 + $0x8] sm:$0xff] %v2263_v41  ;;  %v2266_v50 = vadd.f32 %v2202_v47, %v2138_v45  ;;  %v2267_v51 = vadd.f32 %v2203_v49, %v2139_v48  ;;  %v2140_v52 = vld [vmem:[#allocation2 + $0x130] sm:$0xff]  ;;  %v2141_v54 = vld [vmem:[#allocation2 + $0x48] sm:$0xff]  ;;  %v2205_v56 = vld [vmem:[%s3521_s25 + $0x38] sm:$0xff] }
 0x299   : > { %2328 = vst [vmem:[%s3527_s24 + $0x10] sm:$0xff] %v2264_v42  ;;  %v2204_v53 = vld [vmem:[%s3521_s25 + $0x30] sm:$0xff]  ;;  %v2142_v57 = vld [vmem:[#allocation2 + $0x180] sm:$0xff]  ;;  %v2269_v59 = vadd.f32 %v2205_v56, %v2141_v54  ;;  %v2207_v62 = vld [vmem:[%s3521_s25 + $0x48] sm:$0xff] }
 0x29a   : > { %2329 = vst [vmem:[%s3527_s24 + $0x18] sm:$0xff] %v2265_v46  ;;  %v2268_v55 = vadd.f32 %v2204_v53, %v2140_v52  ;;  %v2206_v58 = vld [vmem:[%s3521_s25 + $0x40] sm:$0xff]  ;;  %2330 = vst [vmem:[%s3527_s24 + $0x20] sm:$0xff] %v2266_v50  ;;  %v2143_v61 = vld [vmem:[#allocation2 + $0x110] sm:$0xff] }
 0x29b   : > { %2331 = vst [vmem:[%s3527_s24 + $0x28] sm:$0xff] %v2267_v51  ;;  %v2270_v60 = vadd.f32 %v2206_v58, %v2142_v57  ;;  %v2144_v63 = vld [vmem:[#allocation2 + $0x118] sm:$0xff]  ;;  %v2271_v0 = vadd.f32 %v2207_v62, %v2143_v61  ;;  %v2208_v1 = vld [vmem:[%s3521_s25 + $0x50] sm:$0xff]  ;;  %2333 = vst [vmem:[%s3527_s24 + $0x38] sm:$0xff] %v2269_v59 }
 0x29c   : > { %2332 = vst [vmem:[%s3527_s24 + $0x30] sm:$0xff] %v2268_v55  ;;  %v2145_v2 = vld [vmem:[#allocation2 + $0x98] sm:$0xff]  ;;  %v2272_v4 = vadd.f32 %v2208_v1, %v2144_v63  ;;  %v2146_v6 = vld [vmem:[#allocation2 + $0x120] sm:$0xff]  ;;  %v2147_v8 = vld [vmem:[#allocation2 + $0x150] sm:$0xff] }
 0x29d   : > { %v2209_v3 = vld [vmem:[%s3521_s25 + $0x58] sm:$0xff]  ;;  %2334 = vst [vmem:[%s3527_s24 + $0x40] sm:$0xff] %v2270_v60  ;;  %v2210_v7 = vld [vmem:[%s3521_s25 + $0x60] sm:$0xff]  ;;  %2335 = vst [vmem:[%s3527_s24 + $0x48] sm:$0xff] %v2271_v0 }
 0x29e   : > { %v2273_v5 = vadd.f32 %v2209_v3, %v2145_v2  ;;  %v2274_v9 = vadd.f32 %v2210_v7, %v2146_v6  ;;  %v2211_v10 = vld [vmem:[%s3521_s25 + $0x68] sm:$0xff]  ;;  %v2212_v12 = vld [vmem:[%s3521_s25 + $0x70] sm:$0xff]  ;;  %2336 = vst [vmem:[%s3527_s24 + $0x50] sm:$0xff] %v2272_v4  ;;  %v2149_v15 = vld [vmem:[#allocation2 + $0x60] sm:$0xff] }
 0x29f   : > { %v2148_v11 = vld [vmem:[#allocation2 + $0x108] sm:$0xff]  ;;  %v2275_v13 = vadd.f32 %v2211_v10, %v2147_v8  ;;  %v2213_v16 = vld [vmem:[%s3521_s25 + $0x78] sm:$0xff]  ;;  %v2150_v17 = vld [vmem:[#allocation2 + $0xe0] sm:$0xff] }
 0x2a0   : > { %2337 = vst [vmem:[%s3527_s24 + $0x58] sm:$0xff] %v2273_v5  ;;  %v2276_v14 = vadd.f32 %v2212_v12, %v2148_v11  ;;  %2338 = vst [vmem:[%s3527_s24 + $0x60] sm:$0xff] %v2274_v9  ;;  %v2277_v18 = vadd.f32 %v2213_v16, %v2149_v15  ;;  %v2214_v19 = vld [vmem:[%s3521_s25 + $0x80] sm:$0xff]  ;;  %v2151_v20 = vld [vmem:[#allocation2 + $0x188] sm:$0xff] }
 0x2a1   : > { %v2215_v21 = vld [vmem:[%s3521_s25 + $0x88] sm:$0xff]  ;;  %2339 = vst [vmem:[%s3527_s24 + $0x68] sm:$0xff] %v2275_v13  ;;  %v2278_v22 = vadd.f32 %v2214_v19, %v2150_v17  ;;  %v2152_v24 = vld [vmem:[#allocation2 + $0x138] sm:$0xff]  ;;  %v2216_v25 = vld [vmem:[%s3521_s25 + $0x90] sm:$0xff] }
 0x2a2   : > { %2340 = vst [vmem:[%s3527_s24 + $0x70] sm:$0xff] %v2276_v14  ;;  %v2279_v23 = vadd.f32 %v2215_v21, %v2151_v20  ;;  %v2153_v26 = vld [vmem:[#allocation2 + $0x140] sm:$0xff]  ;;  %2341 = vst [vmem:[%s3527_s24 + $0x78] sm:$0xff] %v2277_v18  ;;  %v2280_v27 = vadd.f32 %v2216_v25, %v2152_v24  ;;  %v2217_v28 = vld [vmem:[%s3521_s25 + $0x98] sm:$0xff] }
 0x2a3   : > { %v2154_v29 = vld [vmem:[#allocation2 + $0x80] sm:$0xff]  ;;  %2342 = vst [vmem:[%s3527_s24 + $0x80] sm:$0xff] %v2278_v22  ;;  %v2281_v31 = vadd.f32 %v2217_v28, %v2153_v26  ;;  %v2155_v33 = vld [vmem:[#allocation2 + $0x1a8] sm:$0xff]  ;;  %v2156_v35 = vld [vmem:[#allocation2 + $0x1b8] sm:$0xff] }
 0x2a4   : > { %v2218_v30 = vld [vmem:[%s3521_s25 + $0xa0] sm:$0xff]  ;;  %2343 = vst [vmem:[%s3527_s24 + $0x88] sm:$0xff] %v2279_v23  ;;  %v2219_v34 = vld [vmem:[%s3521_s25 + $0xa8] sm:$0xff]  ;;  %2344 = vst [vmem:[%s3527_s24 + $0x90] sm:$0xff] %v2280_v27 }
 0x2a5   : > { %v2282_v32 = vadd.f32 %v2218_v30, %v2154_v29  ;;  %v2283_v36 = vadd.f32 %v2219_v34, %v2155_v33  ;;  %v2220_v37 = vld [vmem:[%s3521_s25 + $0xb0] sm:$0xff]  ;;  %v2157_v38 = vld [vmem:[#allocation2 + $0x28] sm:$0xff]  ;;  %v2221_v39 = vld [vmem:[%s3521_s25 + $0xb8] sm:$0xff]  ;;  %2345 = vst [vmem:[%s3527_s24 + $0x98] sm:$0xff] %v2281_v31 }
 0x2a6   : > { %v2284_v40 = vadd.f32 %v2220_v37, %v2156_v35  ;;  %v2285_v41 = vadd.f32 %v2221_v39, %v2157_v38  ;;  %v2158_v42 = vld [vmem:[#allocation2 + $0x1e8] sm:$0xff]  ;;  %v2222_v43 = vld [vmem:[%s3521_s25 + $0xc0] sm:$0xff]  ;;  %v2159_v44 = vld [vmem:[#allocation2 + $0xf8] sm:$0xff] }
 0x2a7   : > { %2346 = vst [vmem:[%s3527_s24 + $0xa0] sm:$0xff] %v2282_v32  ;;  %2347 = vst [vmem:[%s3527_s24 + $0xa8] sm:$0xff] %v2283_v36  ;;  %v2286_v45 = vadd.f32 %v2222_v43, %v2158_v42  ;;  %v2223_v46 = vld [vmem:[%s3521_s25 + $0xc8] sm:$0xff]  ;;  %v2160_v47 = vld [vmem:[#allocation2 + $0x160] sm:$0xff] }
 0x2a8   : > { %v2224_v48 = vld [vmem:[%s3521_s25 + $0xd0] sm:$0xff]  ;;  %2348 = vst [vmem:[%s3527_s24 + $0xb0] sm:$0xff] %v2284_v40  ;;  %2349 = vst [vmem:[%s3527_s24 + $0xb8] sm:$0xff] %v2285_v41  ;;  %v2287_v49 = vadd.f32 %v2223_v46, %v2159_v44  ;;  %v2225_v52 = vld [vmem:[%s3521_s25 + $0xd8] sm:$0xff] }
 0x2a9   : > { %v2288_v50 = vadd.f32 %v2224_v48, %v2160_v47  ;;  %v2161_v51 = vld [vmem:[#allocation2 + $0x30] sm:$0xff]  ;;  %v2162_v53 = vld [vmem:[#allocation2 + $0x1e0] sm:$0xff]  ;;  %2350 = vst [vmem:[%s3527_s24 + $0xc0] sm:$0xff] %v2286_v45  ;;  %v2227_v57 = vld [vmem:[%s3521_s25 + $0xe8] sm:$0xff] }
 0x2aa   : > { %v2289_v54 = vadd.f32 %v2225_v52, %v2161_v51  ;;  %v2226_v55 = vld [vmem:[%s3521_s25 + $0xe0] sm:$0xff]  ;;  %2351 = vst [vmem:[%s3527_s24 + $0xc8] sm:$0xff] %v2287_v49  ;;  %v2164_v60 = vld [vmem:[#allocation2 + $0xf0] sm:$0xff]  ;;  %v2165_v62 = vld [vmem:[#allocation2 + $0x8] sm:$0xff] }
 0x2ab   : > { %v2163_v56 = vld [vmem:[#allocation2] sm:$0xff]  ;;  %2352 = vst [vmem:[%s3527_s24 + $0xd0] sm:$0xff] %v2288_v50  ;;  %v2290_v58 = vadd.f32 %v2226_v55, %v2162_v53  ;;  %v2228_v61 = vld [vmem:[%s3521_s25 + $0xf0] sm:$0xff]  ;;  %v2229_v0 = vld [vmem:[%s3521_s25 + $0xf8] sm:$0xff] }
 0x2ac   : > { %v2291_v59 = vadd.f32 %v2227_v57, %v2163_v56  ;;  %2353 = vst [vmem:[%s3527_s24 + $0xd8] sm:$0xff] %v2289_v54  ;;  %v2292_v63 = vadd.f32 %v2228_v61, %v2164_v60  ;;  %v2166_v1 = vld [vmem:[#allocation2 + $0x148] sm:$0xff]  ;;  %v2230_v2 = vld [vmem:[%s3521_s25 + $0x100] sm:$0xff]  ;;  %v2293_v3 = vadd.f32 %v2229_v0, %v2165_v62  ;;  %v2167_v5 = vld [vmem:[#allocation2 + $0x1d0] sm:$0xff] }
 0x2ad   : > { %2354 = vst [vmem:[%s3527_s24 + $0xe0] sm:$0xff] %v2290_v58  ;;  %v2294_v4 = vadd.f32 %v2230_v2, %v2166_v1  ;;  %v2231_v6 = vld [vmem:[%s3521_s25 + $0x108] sm:$0xff]  ;;  %v2168_v7 = vld [vmem:[#allocation2 + $0x100] sm:$0xff]  ;;  %v2232_v9 = vld [vmem:[%s3521_s25 + $0x110] sm:$0xff] }
 0x2ae   : > { %2355 = vst [vmem:[%s3527_s24 + $0xe8] sm:$0xff] %v2291_v59  ;;  %2356 = vst [vmem:[%s3527_s24 + $0xf0] sm:$0xff] %v2292_v63  ;;  %v2295_v8 = vadd.f32 %v2231_v6, %v2167_v5  ;;  %v2169_v10 = vld [vmem:[#allocation2 + $0xc8] sm:$0xff]  ;;  %v2233_v11 = vld [vmem:[%s3521_s25 + $0x118] sm:$0xff]  ;;  %v2296_v12 = vadd.f32 %v2232_v9, %v2168_v7 }
 0x2af   : > { %2357 = vst [vmem:[%s3527_s24 + $0xf8] sm:$0xff] %v2293_v3  ;;  %2358 = vst [vmem:[%s3527_s24 + $0x100] sm:$0xff] %v2294_v4  ;;  %v2297_v13 = vadd.f32 %v2233_v11, %v2169_v10  ;;  %v2170_v14 = vld [vmem:[#allocation2 + $0x40] sm:$0xff]  ;;  %v2171_v16 = vld [vmem:[#allocation2 + $0x1f8] sm:$0xff] }
 0x2b0   : > { %v2234_v15 = vld [vmem:[%s3521_s25 + $0x120] sm:$0xff]  ;;  %2359 = vst [vmem:[%s3527_s24 + $0x108] sm:$0xff] %v2295_v8  ;;  %v2235_v18 = vld [vmem:[%s3521_s25 + $0x128] sm:$0xff]  ;;  %v2236_v20 = vld [vmem:[%s3521_s25 + $0x130] sm:$0xff] }
 0x2b1   : > { %v2298_v17 = vadd.f32 %v2234_v15, %v2170_v14  ;;  %v2172_v19 = vld [vmem:[#allocation2 + $0x20] sm:$0xff]  ;;  %2360 = vst [vmem:[%s3527_s24 + $0x110] sm:$0xff] %v2296_v12  ;;  %2361 = vst [vmem:[%s3527_s24 + $0x118] sm:$0xff] %v2297_v13  ;;  %v2299_v21 = vadd.f32 %v2235_v18, %v2171_v16  ;;  %v2173_v23 = vld [vmem:[#allocation2 + $0x128] sm:$0xff] }
 0x2b2   : > { %v2300_v22 = vadd.f32 %v2236_v20, %v2172_v19  ;;  %v2237_v24 = vld [vmem:[%s3521_s25 + $0x138] sm:$0xff]  ;;  %v2174_v25 = vld [vmem:[#allocation2 + $0x1a0] sm:$0xff]  ;;  %v2175_v28 = vld [vmem:[#allocation2 + $0x1f0] sm:$0xff] }
 0x2b3   : > { %2362 = vst [vmem:[%s3527_s24 + $0x120] sm:$0xff] %v2298_v17  ;;  %v2301_v26 = vadd.f32 %v2237_v24, %v2173_v23  ;;  %v2238_v27 = vld [vmem:[%s3521_s25 + $0x140] sm:$0xff]  ;;  %v2239_v29 = vld [vmem:[%s3521_s25 + $0x148] sm:$0xff]  ;;  %2363 = vst [vmem:[%s3527_s24 + $0x128] sm:$0xff] %v2299_v21 }
 0x2b4   : > { %2364 = vst [vmem:[%s3527_s24 + $0x130] sm:$0xff] %v2300_v22  ;;  %v2302_v30 = vadd.f32 %v2238_v27, %v2174_v25  ;;  %v2303_v31 = vadd.f32 %v2239_v29, %v2175_v28  ;;  %v2176_v32 = vld [vmem:[#allocation2 + $0xe8] sm:$0xff]  ;;  %v2240_v33 = vld [vmem:[%s3521_s25 + $0x150] sm:$0xff]  ;;  %v2177_v34 = vld [vmem:[#allocation2 + $0x78] sm:$0xff] }
 0x2b5   : > { %2365 = vst [vmem:[%s3527_s24 + $0x138] sm:$0xff] %v2301_v26  ;;  %v2304_v35 = vadd.f32 %v2240_v33, %v2176_v32  ;;  %v2241_v36 = vld [vmem:[%s3521_s25 + $0x158] sm:$0xff]  ;;  %v2178_v37 = vld [vmem:[#allocation2 + $0x70] sm:$0xff]  ;;  %v2242_v38 = vld [vmem:[%s3521_s25 + $0x160] sm:$0xff] }
 0x2b6   : > { %2366 = vst [vmem:[%s3527_s24 + $0x140] sm:$0xff] %v2302_v30  ;;  %2367 = vst [vmem:[%s3527_s24 + $0x148] sm:$0xff] %v2303_v31  ;;  %v2305_v39 = vadd.f32 %v2241_v36, %v2177_v34  ;;  %v2306_v40 = vadd.f32 %v2242_v38, %v2178_v37  ;;  %v2179_v41 = vld [vmem:[#allocation2 + $0x90] sm:$0xff]  ;;  %v2243_v42 = vld [vmem:[%s3521_s25 + $0x168] sm:$0xff] }
 0x2b7   : > { %v2180_v43 = vld [vmem:[#allocation2 + $0x1d8] sm:$0xff]  ;;  %2368 = vst [vmem:[%s3527_s24 + $0x150] sm:$0xff] %v2304_v35  ;;  %v2307_v44 = vadd.f32 %v2243_v42, %v2179_v41  ;;  %v2244_v45 = vld [vmem:[%s3521_s25 + $0x170] sm:$0xff]  ;;  %v2246_v51 = vld [vmem:[%s3521_s25 + $0x180] sm:$0xff] }
 0x2b8   : > { %v2181_v46 = vld [vmem:[#allocation2 + $0xd0] sm:$0xff]  ;;  %v2245_v47 = vld [vmem:[%s3521_s25 + $0x178] sm:$0xff]  ;;  %2369 = vst [vmem:[%s3527_s24 + $0x158] sm:$0xff] %v2305_v39  ;;  %2370 = vst [vmem:[%s3527_s24 + $0x160] sm:$0xff] %v2306_v40  ;;  %v2308_v48 = vadd.f32 %v2244_v45, %v2180_v43 }
 0x2b9   : > { %v2309_v49 = vadd.f32 %v2245_v47, %v2181_v46  ;;  %v2182_v50 = vld [vmem:[#allocation2 + $0xb8] sm:$0xff]  ;;  %v2183_v52 = vld [vmem:[#allocation2 + $0x88] sm:$0xff]  ;;  %2371 = vst [vmem:[%s3527_s24 + $0x168] sm:$0xff] %v2307_v44  ;;  %v2248_v56 = vld [vmem:[%s3521_s25 + $0x190] sm:$0xff] }
 0x2ba   : > { %v2310_v53 = vadd.f32 %v2246_v51, %v2182_v50  ;;  %v2247_v54 = vld [vmem:[%s3521_s25 + $0x188] sm:$0xff]  ;;  %2372 = vst [vmem:[%s3527_s24 + $0x170] sm:$0xff] %v2308_v48  ;;  %v2249_v60 = vld [vmem:[%s3521_s25 + $0x198] sm:$0xff]  ;;  %v2186_v61 = vld [vmem:[#allocation2 + $0x170] sm:$0xff] }
 0x2bb   : > { %v2184_v55 = vld [vmem:[#allocation2 + $0xa8] sm:$0xff]  ;;  %2373 = vst [vmem:[%s3527_s24 + $0x178] sm:$0xff] %v2309_v49  ;;  %v2311_v57 = vadd.f32 %v2247_v54, %v2183_v52  ;;  %v2250_v63 = vld [vmem:[%s3521_s25 + $0x1a0] sm:$0xff]  ;;  %v2187_v0 = vld [vmem:[#allocation2 + $0x178] sm:$0xff] }
 0x2bc   : > { %v2312_v58 = vadd.f32 %v2248_v56, %v2184_v55  ;;  %v2185_v59 = vld [vmem:[#allocation2 + $0x1c8] sm:$0xff]  ;;  %2374 = vst [vmem:[%s3527_s24 + $0x180] sm:$0xff] %v2310_v53  ;;  %v2314_v2 = vadd.f32 %v2250_v63, %v2186_v61  ;;  %v2252_v5 = vld [vmem:[%s3521_s25 + $0x1b0] sm:$0xff]  ;;  %v2253_v8 = vld [vmem:[%s3521_s25 + $0x1b8] sm:$0xff] }
 0x2bd   : > { %v2313_v62 = vadd.f32 %v2249_v60, %v2185_v59  ;;  %v2251_v1 = vld [vmem:[%s3521_s25 + $0x1a8] sm:$0xff]  ;;  %2375 = vst [vmem:[%s3527_s24 + $0x188] sm:$0xff] %v2311_v57  ;;  %v2189_v6 = vld [vmem:[#allocation2 + $0x190] sm:$0xff]  ;;  %v2190_v9 = vld [vmem:[#allocation2 + $0x198] sm:$0xff] }
 0x2be   : > { %2376 = vst [vmem:[%s3527_s24 + $0x190] sm:$0xff] %v2312_v58  ;;  %v2315_v3 = vadd.f32 %v2251_v1, %v2187_v0  ;;  %v2188_v4 = vld [vmem:[#allocation2 + $0x68] sm:$0xff]  ;;  %v2254_v10 = vld [vmem:[%s3521_s25 + $0x1c0] sm:$0xff]  ;;  %2378 = vst [vmem:[%s3527_s24 + $0x1a0] sm:$0xff] %v2314_v2  ;;  %v2317_v11 = vadd.f32 %v2253_v8, %v2189_v6 }
 0x2bf   : > { %2377 = vst [vmem:[%s3527_s24 + $0x198] sm:$0xff] %v2313_v62  ;;  %v2316_v7 = vadd.f32 %v2252_v5, %v2188_v4  ;;  %v2318_v12 = vadd.f32 %v2254_v10, %v2190_v9  ;;  %v2191_v13 = vld [vmem:[#allocation2 + $0x38] sm:$0xff]  ;;  %v2255_v14 = vld [vmem:[%s3521_s25 + $0x1c8] sm:$0xff]  ;;  %v2192_v15 = vld [vmem:[#allocation2 + $0xc0] sm:$0xff] }
 0x2c0   : > { %2379 = vst [vmem:[%s3527_s24 + $0x1a8] sm:$0xff] %v2315_v3  ;;  %v2319_v16 = vadd.f32 %v2255_v14, %v2191_v13  ;;  %v2256_v17 = vld [vmem:[%s3521_s25 + $0x1d0] sm:$0xff]  ;;  %v2193_v18 = vld [vmem:[#allocation2 + $0x1c0] sm:$0xff]  ;;  %v2257_v19 = vld [vmem:[%s3521_s25 + $0x1d8] sm:$0xff] }
 0x2c1   : > { %2380 = vst [vmem:[%s3527_s24 + $0x1b0] sm:$0xff] %v2316_v7  ;;  %2381 = vst [vmem:[%s3527_s24 + $0x1b8] sm:$0xff] %v2317_v11  ;;  %v2320_v20 = vadd.f32 %v2256_v17, %v2192_v15  ;;  %v2321_v21 = vadd.f32 %v2257_v19, %v2193_v18  ;;  %v2194_v22 = vld [vmem:[#allocation2 + $0x158] sm:$0xff]  ;;  %v2258_v23 = vld [vmem:[%s3521_s25 + $0x1e0] sm:$0xff] }
 0x2c2   : > { %2382 = vst [vmem:[%s3527_s24 + $0x1c0] sm:$0xff] %v2318_v12  ;;  %v2195_v24 = vld [vmem:[#allocation2 + $0x10] sm:$0xff]  ;;  %2383 = vst [vmem:[%s3527_s24 + $0x1c8] sm:$0xff] %v2319_v16  ;;  %v2322_v25 = vadd.f32 %v2258_v23, %v2194_v22  ;;  %v2259_v26 = vld [vmem:[%s3521_s25 + $0x1e8] sm:$0xff] }
 0x2c3   : > { %v2196_v27 = vld [vmem:[#allocation2 + $0x58] sm:$0xff]  ;;  %v2260_v28 = vld [vmem:[%s3521_s25 + $0x1f0] sm:$0xff]  ;;  %2384 = vst [vmem:[%s3527_s24 + $0x1d0] sm:$0xff] %v2320_v20  ;;  %2385 = vst [vmem:[%s3527_s24 + $0x1d8] sm:$0xff] %v2321_v21  ;;  %v2323_v29 = vadd.f32 %v2259_v26, %v2195_v24 }
 0x2c4   : > { %v2324_v30 = vadd.f32 %v2260_v28, %v2196_v27  ;;  %v2197_v31 = vld [vmem:[#allocation2 + $0xa0] sm:$0xff]  ;;  %v2261_v32 = vld [vmem:[%s3521_s25 + $0x1f8] sm:$0xff]  ;;  %2386 = vst [vmem:[%s3527_s24 + $0x1e0] sm:$0xff] %v2322_v25 }
 0x2c5   : > { %v2325_v33 = vadd.f32 %v2261_v32, %v2197_v31  ;;  %2387 = vst [vmem:[%s3527_s24 + $0x1e8] sm:$0xff] %v2323_v29 }
 0x2c6   : > { %2388 = vst [vmem:[%s3527_s24 + $0x1f0] sm:$0xff] %v2324_v30 }
 0x2c7   : > { %2389 = vst [vmem:[%s3527_s24 + $0x1f8] sm:$0xff] %v2325_v33 }
 0x2c8 PF: > { %s4023_s18 = sld [smem:[#allocation14_spill]]  ;;  %s2404_s27 = sshll.u32 %s3527_s24, 4  ;;  %s3925_s27 = int_to_ptr.vmem [resolvable:$true] %s2404_s27 }
 0x2c9   : > { %s4024_s21 = sld [smem:[#allocation20_spill]]  ;;  %s3929_s6 = scalar_lea.sflag [#allocation5], %s228_s26 }
 0x2ca   : > { %s3148_s30 = scalar_lea.vmem %s3925_s27, 8192  ;;  %s3290_s19 = smov [#allocation9]  }
 0x2cb   : > { %p3149_p4 = scmp.ne.s32.totalorder %s3925_s27, %s3148_s30  ;;  %s3152_s9 = sshll.u32 %s3290_s19, 4  ;;  %s3153_s9 = int_to_ptr.vmem [resolvable:$false] %s3152_s9 }
 0x2cc   : > { %s3154_s25 = scalar_lea.vmem %s3153_s9, 16384  ;;  %p3155_p9 = scmp.lt.s32.totalorder %s3925_s27, %s3153_s9 }
 0x2cd   : > { %p3150_p8 = pnand %p3149_p4, %p3486_p0  ;;  %p3156_p13 = scmp.lt.s32.totalorder %s3154_s25, %s3148_s30 }
 0x2ce   : > { %s2712_s5 = sshll.u32 %s4023_s18, 13 }
 0x2cf   : > { %s4025_s0 = smov %s4024_s21  ;;  %s3922_s29 = scalar_lea.hbm %s4024_s21, %s2712_s5 }
 0x2d0   : > { %p3151_p5 = pneg %p3150_p8  ;;  %p3157_p1 = por %p3156_p13, %p3155_p9 }
 0x2d2   : > { %p3158_p2 = pnand %p3157_p1, %p3151_p5 }
 0x2d4   : > { %3161 = shalt.err (!%p3158_p2)
}
 0x2d5   : > { %s3162_s26 = scalar_lea.hbm %s3922_s29, 8192  ;;  %s3166_s7 = scalar_lea.hbm %s4025_s0, 16384 }
 0x2d6   : > { %p3163_p6 = scmp.ne.s32.totalorder %s3922_s29, %s3162_s26  ;;  %p3167_p3 = scmp.lt.s32.totalorder %s3922_s29, %s4025_s0 }
 0x2d7   : > { %p3168_p11 = scmp.lt.s32.totalorder %s3166_s7, %s3162_s26 }
 0x2d8   : > { %p3164_p10 = pnand %p3163_p6, %p3486_p0 }
 0x2d9   : > { %p3169_p7 = por %p3168_p11, %p3167_p3 }
 0x2da   : > { %p3165_p12 = pneg %p3164_p10 }
 0x2dc   : > { %p3170_p4 = pnand %p3169_p7, %p3165_p12 }
 0x2de   : > { %3173 = shalt.err (!%p3170_p4)
}
 0x2df   : > { %s3291_s18 = smov 128   ;;  %s3292_s5 = smov 8  }
 0x2e0   : > { %2721 = dma.vmem_to_hbm [thread:$0]  (%p3486_p0), %s3925_s27, 8192, %s3922_s29, %s3929_s6, %s3291_s18, %s3291_s18, %s3292_s5  }
 0x2e1 PF: > { %p2741_p8 = scmp.ge.s32.totalorder %s3276_s22, 2  ;;  %s2419_s23 = sand.u32 1, %s3236_s12  }
 0x2e2   : > { %p4026_p5 = scmp.ne.s32.totalorder %s4013_s15, 0  ;;  %s2420_s20 = scalar_lea.sflag [#allocation5], %s2419_s23 }
 0x2e4   : > { %p2735_p9 = pnand %p2741_p8, %p4026_p5 }
 0x2e6   : > { %p2736_p13 = pneg %p2735_p9 }
 0x2e8   : > { %3231 = dma.done.wait (%p2736_p13), %s2420_s20, 8192  }
 0x2e9   : > { %3233 = vsyncadd (%p2736_p13), %s2420_s20, 4294959104  ;;  %s20_s22 = sadd.s32 1, %s3276_s22   ;;  %s4027_s18 = sld [smem:[#allocation15_spill]] }
 0x2ea   : > { %p17_p1 = scmp.ge.s32.totalorder %s20_s22, 6   ;;  %s4028_s19 = sld [smem:[#allocation16_spill]] }
 0x2eb   : > { %s4029_s20 = sld [smem:[#allocation17_spill]]  ;;  %s4031_s12 = smov %s3240_s13 }
 0x2ec   : > { %s4030_s21 = sld [smem:[#allocation18_spill]]  ;;  %s4032_s13 = smov %s3244_s14 }
 0x2ed   : > { %s4033_s14 = smov %s3474_s10  ;;  %s4034_s15 = smov %s3252_s16 }
 0x2ee   : > { %s4035_s16 = smov %s3256_s17  ;;  %s4036_s17 = smov %s3399_s8 }
 0x2ef   :  { %19 = sbr.rel (!%p17_p1) target bundleno = 13 (0xd), region = 101 }
 0x2f4   :  { %2425 = vsyncpa [#allocation4], 1 }
 0x2f5   :  { %2427 = vsyncpa [#allocation4 + $0x1], 1 }
 0x2f6   :  { %2428 = vsyncpa [#allocation7], 1 }
 0x2f7   :  { %2429 = vsyncpa [#allocation5], 1 }
 0x2f8   :  { %2431 = vsyncpa [#allocation5 + $0x1], 1 }

</bundles_post_ra>
